<compile_context>
chip_gen: v6e
topology: v6e:2x2x1
jax: 0.10.0
libtpu: 0.0.40
codegen_flags: <defaults>
</compile_context>

<pallas_src>
import jax
import jax.numpy as jnp
import numpy as np
from jax.experimental import pallas as pl
from jax.experimental.pallas import tpu as pltpu

# Model dimensions (head dims fixed by the PyTorch module; batch/seq kept small).
B = 8          # batch
S = 16         # sequence length (BERT tokens)
H = 768        # BERT hidden size
VEC = 3 * H    # concatenated feature vector length (2304)
MID = 256      # linear1 output
HID = 64       # hidden_state
LBL = 4        # labels


def _temprel_kernel(spans_ref, x_ref, w1_ref, b1_ref, w2_ref, b2_ref,
                    w3_ref, b3_ref, out_ref, acc_ref):
    """Grid (batch_tile i, feature-chunk k).

    spans_ref: VMEM i32 [TB, 4] = (e1_start, e1_end, e2_start, e2_end)
    x_ref:     VMEM f32 [TB, S, H]
    w1_ref:    VMEM bf16 [H, MID]  (chunk k of the [3H, MID] weight)
    acc_ref:   VMEM f32 scratch [TB, MID] accumulator over k
    out_ref:   VMEM f32 [TB, LBL] softmax probabilities (written at last k)
    """
    k = pl.program_id(1)
    nk = pl.num_programs(1)
    tb, s_len, _ = x_ref.shape

    @pl.when(k == 0)
    def _():
        acc_ref[...] = jnp.zeros_like(acc_ref)

    # ---- get_event_tensors (vectorized over the batch tile) ----
    # Chunk k of the concatenated feature:
    #   k == 0 -> mean over span1, k == 1 -> mean over span2,
    #   k == 2 -> CLS vector  ==  mean over the [0, 1) "span".
    sp = spans_ref[...]                                   # (TB, 4) int32
    s1, e1 = sp[:, 0:1], sp[:, 1:2]
    s2, e2 = sp[:, 2:3], sp[:, 3:4]
    start = jnp.where(k == 0, s1, jnp.where(k == 1, s2, jnp.zeros_like(s1)))
    end = jnp.where(k == 0, e1, jnp.where(k == 1, e2, jnp.ones_like(e1)))

    idx = jax.lax.broadcasted_iota(jnp.int32, (tb, s_len, 1), 1)
    mask = (idx >= start[:, :, None]) & (idx < end[:, :, None])   # (TB, S, 1)
    pooled = jnp.sum(jnp.where(mask, x_ref[...], 0.0), axis=1)    # (TB, H) f32
    cnt = jnp.maximum(end - start, 1).astype(jnp.float32)         # (TB, 1)
    pooled = pooled * pl.reciprocal(cnt, approx=True)

    # ---- linear1, accumulated over the three 768-row chunks of W1 ----
    acc_ref[...] += jnp.dot(pooled.astype(w1_ref.dtype), w1_ref[...],
                            preferred_element_type=jnp.float32)

    # ---- relu -> linear2 -> relu -> output -> softmax (at last chunk) ----
    @pl.when(k == nk - 1)
    def _():
        h1 = jnp.maximum(acc_ref[...] + b1_ref[...], 0.0)
        h2 = jnp.dot(h1.astype(w2_ref.dtype), w2_ref[...],
                     preferred_element_type=jnp.float32) + b2_ref[...]
        h2 = jnp.maximum(h2, 0.0)
        logits = jnp.dot(h2.astype(w3_ref.dtype), w3_ref[...],
                         preferred_element_type=jnp.float32) + b3_ref[...]
        mx = jnp.max(logits, axis=1, keepdims=True)
        ex = jnp.exp(logits - mx)
        denom = jnp.sum(ex, axis=1, keepdims=True)
        out_ref[...] = ex * pl.reciprocal(denom, approx=True)


def bert_temprel_head(x, spans, w1, b1, w2, b2, w3, b3, *, batch_tile=8):
    """x: [B,S,H] f32 BERT hidden states; spans: [B,4] int32 span boundaries."""
    bsz, seq, hid = x.shape
    vec, mid = w1.shape
    lbl = w3.shape[1]
    assert vec == 3 * hid
    nk = vec // hid                      # 3 chunks of W1, one per feature piece

    tb = batch_tile
    pad = (-bsz) % tb
    if pad:
        x = jnp.pad(x, ((0, pad), (0, 0), (0, 0)))
        spans = jnp.pad(spans, ((0, pad), (0, 0)))
    nb = (bsz + pad) // tb

    # bf16 weights: W1 is ~85% of the HBM traffic and the MXU is bf16-native.
    w1 = w1.astype(jnp.bfloat16)
    w2 = w2.astype(jnp.bfloat16)
    w3 = w3.astype(jnp.bfloat16)

    out = pl.pallas_call(
        _temprel_kernel,
        out_shape=jax.ShapeDtypeStruct((bsz + pad, lbl), jnp.float32),
        grid_spec=pltpu.PrefetchScalarGridSpec(
            num_scalar_prefetch=0,
            grid=(nb, nk),
            in_specs=[
                pl.BlockSpec((tb, 4), lambda i, k: (i, 0)),            # spans
                pl.BlockSpec((tb, seq, hid), lambda i, k: (i, 0, 0)),  # x
                pl.BlockSpec((hid, mid), lambda i, k: (k, 0)),         # W1 chunk
                pl.BlockSpec((1, mid), lambda i, k: (0, 0)),           # b1
                pl.BlockSpec((mid, HID), lambda i, k: (0, 0)),         # W2
                pl.BlockSpec((1, HID), lambda i, k: (0, 0)),           # b2
                pl.BlockSpec((HID, lbl), lambda i, k: (0, 0)),         # W3
                pl.BlockSpec((1, lbl), lambda i, k: (0, 0)),           # b3
            ],
            out_specs=pl.BlockSpec((tb, lbl), lambda i, k: (i, 0)),
            scratch_shapes=[pltpu.VMEM((tb, mid), jnp.float32)],
        ),
        compiler_params=pltpu.CompilerParams(
            dimension_semantics=("parallel", "arbitrary")),
    )(spans, x, w1, b1, w2, b2, w3, b3)
    return out[:bsz]


def _reference(x, spans, w1, b1, w2, b2, w3, b3):
    """Pure-JAX reference (mirrors the kernel's bf16 matmul inputs)."""
    _, seq, _ = x.shape
    idx = jnp.arange(seq)[None, :, None]                          # (1, S, 1)
    s1 = spans[:, 0][:, None, None]; e1 = spans[:, 1][:, None, None]
    s2 = spans[:, 2][:, None, None]; e2 = spans[:, 3][:, None, None]
    m1 = (idx >= s1) & (idx < e1)
    m2 = (idx >= s2) & (idx < e2)
    c1 = jnp.maximum(spans[:, 1] - spans[:, 0], 1).astype(jnp.float32)[:, None]
    c2 = jnp.maximum(spans[:, 3] - spans[:, 2], 1).astype(jnp.float32)[:, None]
    mean1 = jnp.sum(jnp.where(m1, x, 0.0), axis=1) / c1
    mean2 = jnp.sum(jnp.where(m2, x, 0.0), axis=1) / c2
    feat = jnp.concatenate([mean1, mean2, x[:, 0, :]], axis=1)

    bf16 = jnp.bfloat16
    h1 = jax.nn.relu(jnp.dot(feat.astype(bf16), w1.astype(bf16),
                             preferred_element_type=jnp.float32) + b1)
    h2 = jax.nn.relu(jnp.dot(h1.astype(bf16), w2.astype(bf16),
                             preferred_element_type=jnp.float32) + b2)
    logits = jnp.dot(h2.astype(bf16), w3.astype(bf16),
                     preferred_element_type=jnp.float32) + b3
    return jax.nn.softmax(logits, axis=1)


def _linear_init(key, fan_in, fan_out):
    """PyTorch-style uniform(-1/sqrt(fan_in), 1/sqrt(fan_in)) init, [in,out] layout."""
    kw, kb = jax.random.split(key)
    bound = 1.0 / np.sqrt(fan_in)
    w = jax.random.uniform(kw, (fan_in, fan_out), jnp.float32, -bound, bound)
    b = jax.random.uniform(kb, (1, fan_out), jnp.float32, -bound, bound)
    return w, b


if __name__ == "__main__":
    key = jax.random.PRNGKey(0)
    kx, ks, k1, k2, k3 = jax.random.split(key, 5)

    # Synthetic BERT hidden states (stand-in for the pretrained encoder output).
    x = jax.random.normal(kx, (B, S, H), jnp.float32)

    # Deterministic event spans: [start, end) token ranges inside the sequence,
    # as get_event_tensors would derive from the tokenizer output.
    starts1 = jax.random.randint(ks, (B,), 1, S // 2)
    starts2 = starts1 + 3
    spans = jnp.stack(
        [starts1, starts1 + 2, starts2, starts2 + 2], axis=1
    ).astype(jnp.int32)                                          # (B, 4)

    # Head parameters: linear1 (2304->256), linear2 (256->64), output (64->4).
    w1, b1 = _linear_init(k1, VEC, MID)
    w2, b2 = _linear_init(k2, MID, HID)
    w3, b3 = _linear_init(k3, HID, LBL)

    out = bert_temprel_head(x, spans, w1, b1, w2, b2, w3, b3)
    out = jax.block_until_ready(out)

    ref = _reference(x, spans, w1, b1, w2, b2, w3, b3)
    np.testing.assert_allclose(np.asarray(out), np.asarray(ref),
                               rtol=5e-3, atol=5e-4)
    assert out.shape == (B, LBL)
    print("KERNEL_OK")
</pallas_src>

<mosaic_0001>
module attributes {stable_mosaic.version = 11 : i64} {
  func.func @_temprel_kernel(%arg0: i32, %arg1: i32, %arg2: memref<8x4xi32, #tpu.memory_space<vmem>>, %arg3: memref<8x16x768xf32, #tpu.memory_space<vmem>>, %arg4: memref<768x256xbf16, #tpu.memory_space<vmem>>, %arg5: memref<1x256xf32, #tpu.memory_space<vmem>>, %arg6: memref<256x64xbf16, #tpu.memory_space<vmem>>, %arg7: memref<1x64xf32, #tpu.memory_space<vmem>>, %arg8: memref<64x4xbf16, #tpu.memory_space<vmem>>, %arg9: memref<1x4xf32, #tpu.memory_space<vmem>>, %arg10: memref<8x4xf32, #tpu.memory_space<vmem>>, %arg11: memref<8x256xf32, #tpu.memory_space<vmem>>) attributes {dimension_semantics = [#tpu.dimension_semantics<parallel>, #tpu.dimension_semantics<arbitrary>], iteration_bounds = array<i64: 1, 3>, scalar_prefetch = 0 : i64, scratch_operands = 1 : i64, tpu.core_type = #tpu.core_type<tc>, window_params = [{transform_indices = @transform_0, window_bounds = array<i64: 8, 4>}, {transform_indices = @transform_1, window_bounds = array<i64: 8, 16, 768>}, {transform_indices = @transform_2, window_bounds = array<i64: 768, 256>}, {pipeline_mode = #tpu.pipeline_mode<synchronous>, transform_indices = @transform_3, window_bounds = array<i64: 1, 256>}, {pipeline_mode = #tpu.pipeline_mode<synchronous>, transform_indices = @transform_4, window_bounds = array<i64: 256, 64>}, {pipeline_mode = #tpu.pipeline_mode<synchronous>, transform_indices = @transform_5, window_bounds = array<i64: 1, 64>}, {pipeline_mode = #tpu.pipeline_mode<synchronous>, transform_indices = @transform_6, window_bounds = array<i64: 64, 4>}, {pipeline_mode = #tpu.pipeline_mode<synchronous>, transform_indices = @transform_7, window_bounds = array<i64: 1, 4>}, {transform_indices = @transform_8, window_bounds = array<i64: 8, 4>}]} {
    %c0_i32 = arith.constant 0 : i32
    %0 = arith.cmpi eq, %arg1, %c0_i32 : i32
    %1 = arith.extui %0 : i1 to i32
    %c0_i32_0 = arith.constant 0 : i32
    %2 = arith.cmpi ne, %1, %c0_i32_0 : i32
    scf.if %2 {
      %cst_20 = arith.constant 0.000000e+00 : f32
      %48 = vector.broadcast %cst_20 : f32 to vector<8x256xf32>
      %c0_21 = arith.constant 0 : index
      %c0_22 = arith.constant 0 : index
      %49 = vector.load %arg11[%c0_21, %c0_22] : memref<8x256xf32, #tpu.memory_space<vmem>>, vector<8x256xf32>
      tpu.vector_store %arg11[%c0_21, %c0_22], %48 {strides = array<i32>} : memref<8x256xf32, #tpu.memory_space<vmem>>, vector<8x256xf32>,
    } else {
    }
    %c0 = arith.constant 0 : index
    %c0_1 = arith.constant 0 : index
    %3 = vector.load %arg2[%c0, %c0_1] : memref<8x4xi32, #tpu.memory_space<vmem>>, vector<8x4xi32>
    %4 = vector.extract_strided_slice %3 {offsets = [0, 0], sizes = [8, 1], strides = [1, 1]} : vector<8x4xi32> to vector<8x1xi32>
    %5 = vector.extract_strided_slice %3 {offsets = [0, 1], sizes = [8, 1], strides = [1, 1]} : vector<8x4xi32> to vector<8x1xi32>
    %6 = vector.extract_strided_slice %3 {offsets = [0, 2], sizes = [8, 1], strides = [1, 1]} : vector<8x4xi32> to vector<8x1xi32>
    %7 = vector.extract_strided_slice %3 {offsets = [0, 3], sizes = [8, 1], strides = [1, 1]} : vector<8x4xi32> to vector<8x1xi32>
    %c0_i32_2 = arith.constant 0 : i32
    %8 = arith.cmpi eq, %arg1, %c0_i32_2 : i32
    %c1_i32 = arith.constant 1 : i32
    %9 = arith.cmpi eq, %arg1, %c1_i32 : i32
    %c0_i32_3 = arith.constant 0 : i32
    %10 = vector.broadcast %c0_i32_3 : i32 to vector<8x1xi32>
    %11 = arith.select %9, %6, %10 : vector<8x1xi32>
    %12 = arith.select %8, %4, %11 : vector<8x1xi32>
    %c0_i32_4 = arith.constant 0 : i32
    %13 = arith.cmpi eq, %arg1, %c0_i32_4 : i32
    %c1_i32_5 = arith.constant 1 : i32
    %14 = arith.cmpi eq, %arg1, %c1_i32_5 : i32
    %c1_i32_6 = arith.constant 1 : i32
    %15 = vector.broadcast %c1_i32_6 : i32 to vector<8x1xi32>
    %16 = arith.select %14, %7, %15 : vector<8x1xi32>
    %17 = arith.select %13, %5, %16 : vector<8x1xi32>
    %18 = tpu.iota {dimensions = array<i32: 1>} : vector<8x16x1xi32>
    %19 = vector.shape_cast %12 : vector<8x1xi32> to vector<8x1x1xi32>
    %20 = vector.broadcast %19 : vector<8x1x1xi32> to vector<8x16x1xi32>
    %21 = arith.cmpi sge, %18, %20 : vector<8x16x1xi32>
    %22 = vector.shape_cast %17 : vector<8x1xi32> to vector<8x1x1xi32>
    %23 = vector.broadcast %22 : vector<8x1x1xi32> to vector<8x16x1xi32>
    %24 = arith.cmpi slt, %18, %23 : vector<8x16x1xi32>
    %25 = arith.andi %21, %24 : vector<8x16x1xi1>
    %c0_7 = arith.constant 0 : index
    %c0_8 = arith.constant 0 : index
    %c0_9 = arith.constant 0 : index
    %26 = vector.load %arg3[%c0_7, %c0_8, %c0_9] : memref<8x16x768xf32, #tpu.memory_space<vmem>>, vector<8x16x768xf32>
    %cst = arith.constant 0.000000e+00 : f32
    %27 = vector.shape_cast %25 : vector<8x16x1xi1> to vector<8x16x1xi1>
    %28 = vector.broadcast %27 : vector<8x16x1xi1> to vector<8x16x768xi1>
    %29 = vector.broadcast %cst : f32 to vector<8x16x768xf32>
    %30 = arith.select %28, %26, %29 : vector<8x16x768xi1>, vector<8x16x768xf32>
    %cst_10 = arith.constant dense<0.000000e+00> : vector<8x768xf32>
    %31 = vector.multi_reduction <add>, %30, %cst_10 [1] : vector<8x16x768xf32> to vector<8x768xf32>
    %32 = arith.subi %17, %12 : vector<8x1xi32>
    %c1_i32_11 = arith.constant 1 : i32
    %33 = vector.broadcast %c1_i32_11 : i32 to vector<8x1xi32>
    %34 = arith.maxsi %32, %33 : vector<8x1xi32>
    %35 = arith.sitofp %34 : vector<8x1xi32> to vector<8x1xf32>
    %36 = tpu.reciprocal %35 {approx = true} : vector<8x1xf32> -> vector<8x1xf32>
    %37 = vector.broadcast %36 : vector<8x1xf32> to vector<8x768xf32>
    %38 = arith.mulf %31, %37 : vector<8x768xf32>
    %c0_12 = arith.constant 0 : index
    %c0_13 = arith.constant 0 : index
    %39 = vector.load %arg11[%c0_12, %c0_13] : memref<8x256xf32, #tpu.memory_space<vmem>>, vector<8x256xf32>
    %40 = arith.truncf %38 : vector<8x768xf32> to vector<8x768xbf16>
    %c0_14 = arith.constant 0 : index
    %c0_15 = arith.constant 0 : index
    %41 = vector.load %arg4[%c0_14, %c0_15] : memref<768x256xbf16, #tpu.memory_space<vmem>>, vector<768x256xbf16>
    %cst_16 = arith.constant dense<0.000000e+00> : vector<8x256xf32>
    %42 = tpu.matmul %40, %41, %cst_16 {dimension_numbers = #tpu.dot_dimension_numbers<[1], [0], [0], [1], [0, 0, 1, 1], [], []>} : vector<8x768xbf16>, vector<768x256xbf16>, vector<8x256xf32> -> vector<8x256xf32>
    %43 = arith.addf %39, %42 : vector<8x256xf32>
    %c0_17 = arith.constant 0 : index
    %c0_18 = arith.constant 0 : index
    %44 = vector.load %arg11[%c0_17, %c0_18] : memref<8x256xf32, #tpu.memory_space<vmem>>, vector<8x256xf32>
    tpu.vector_store %arg11[%c0_17, %c0_18], %43 {strides = array<i32>} : memref<8x256xf32, #tpu.memory_space<vmem>>, vector<8x256xf32>,
    %c2_i32 = arith.constant 2 : i32
    %45 = arith.cmpi eq, %arg1, %c2_i32 : i32
    %46 = arith.extui %45 : i1 to i32
    %c0_i32_19 = arith.constant 0 : i32
    %47 = arith.cmpi ne, %46, %c0_i32_19 : i32
    scf.if %47 {
      %c0_20 = arith.constant 0 : index
      %c0_21 = arith.constant 0 : index
      %48 = vector.load %arg11[%c0_20, %c0_21] : memref<8x256xf32, #tpu.memory_space<vmem>>, vector<8x256xf32>
      %c0_22 = arith.constant 0 : index
      %c0_23 = arith.constant 0 : index
      %49 = vector.load %arg5[%c0_22, %c0_23] : memref<1x256xf32, #tpu.memory_space<vmem>>, vector<1x256xf32>
      %50 = vector.broadcast %49 : vector<1x256xf32> to vector<8x256xf32>
      %51 = arith.addf %48, %50 : vector<8x256xf32>
      %cst_24 = arith.constant 0.000000e+00 : f32
      %52 = vector.broadcast %cst_24 : f32 to vector<8x256xf32>
      %53 = arith.maximumf %51, %52 : vector<8x256xf32>
      %54 = arith.truncf %53 : vector<8x256xf32> to vector<8x256xbf16>
      %c0_25 = arith.constant 0 : index
      %c0_26 = arith.constant 0 : index
      %55 = vector.load %arg6[%c0_25, %c0_26] : memref<256x64xbf16, #tpu.memory_space<vmem>>, vector<256x64xbf16>
      %cst_27 = arith.constant dense<0.000000e+00> : vector<8x64xf32>
      %56 = tpu.matmul %54, %55, %cst_27 {dimension_numbers = #tpu.dot_dimension_numbers<[1], [0], [0], [1], [0, 0, 1, 1], [], []>} : vector<8x256xbf16>, vector<256x64xbf16>, vector<8x64xf32> -> vector<8x64xf32>
      %c0_28 = arith.constant 0 : index
      %c0_29 = arith.constant 0 : index
      %57 = vector.load %arg7[%c0_28, %c0_29] : memref<1x64xf32, #tpu.memory_space<vmem>>, vector<1x64xf32>
      %58 = vector.broadcast %57 : vector<1x64xf32> to vector<8x64xf32>
      %59 = arith.addf %56, %58 : vector<8x64xf32>
      %cst_30 = arith.constant 0.000000e+00 : f32
      %60 = vector.broadcast %cst_30 : f32 to vector<8x64xf32>
      %61 = arith.maximumf %59, %60 : vector<8x64xf32>
      %62 = arith.truncf %61 : vector<8x64xf32> to vector<8x64xbf16>
      %c0_31 = arith.constant 0 : index
      %c0_32 = arith.constant 0 : index
      %63 = vector.load %arg8[%c0_31, %c0_32] : memref<64x4xbf16, #tpu.memory_space<vmem>>, vector<64x4xbf16>
      %cst_33 = arith.constant dense<0.000000e+00> : vector<8x4xf32>
      %64 = tpu.matmul %62, %63, %cst_33 {dimension_numbers = #tpu.dot_dimension_numbers<[1], [0], [0], [1], [0, 0, 1, 1], [], []>} : vector<8x64xbf16>, vector<64x4xbf16>, vector<8x4xf32> -> vector<8x4xf32>
      %c0_34 = arith.constant 0 : index
      %c0_35 = arith.constant 0 : index
      %65 = vector.load %arg9[%c0_34, %c0_35] : memref<1x4xf32, #tpu.memory_space<vmem>>, vector<1x4xf32>
      %66 = vector.broadcast %65 : vector<1x4xf32> to vector<8x4xf32>
      %67 = arith.addf %64, %66 : vector<8x4xf32>
      %cst_36 = arith.constant dense<0xFF800000> : vector<8xf32>
      %68 = vector.multi_reduction <maximumf>, %67, %cst_36 [1] : vector<8x4xf32> to vector<8xf32>
      %69 = vector.shape_cast %68 : vector<8xf32> to vector<8x1xf32>
      %70 = vector.broadcast %69 : vector<8x1xf32> to vector<8x4xf32>
      %71 = arith.subf %67, %70 : vector<8x4xf32>
      %72 = math.exp %71 : vector<8x4xf32>
      %cst_37 = arith.constant dense<0.000000e+00> : vector<8xf32>
      %73 = vector.multi_reduction <add>, %72, %cst_37 [1] : vector<8x4xf32> to vector<8xf32>
      %74 = vector.shape_cast %73 : vector<8xf32> to vector<8x1xf32>
      %75 = tpu.reciprocal %74 {approx = true} : vector<8x1xf32> -> vector<8x1xf32>
      %76 = vector.broadcast %75 : vector<8x1xf32> to vector<8x4xf32>
      %77 = arith.mulf %72, %76 : vector<8x4xf32>
      %c0_38 = arith.constant 0 : index
      %c0_39 = arith.constant 0 : index
      %78 = vector.load %arg10[%c0_38, %c0_39] : memref<8x4xf32, #tpu.memory_space<vmem>>, vector<8x4xf32>
      tpu.vector_store %arg10[%c0_38, %c0_39], %77 {strides = array<i32>} : memref<8x4xf32, #tpu.memory_space<vmem>>, vector<8x4xf32>,
    } else {
    }
    return
  }
  func.func @transform_0(%arg0: i32, %arg1: i32) -> (i32, i32) {
    %c0_i32 = arith.constant 0 : i32
    %c0_i32_0 = arith.constant 0 : i32
    return %arg0, %c0_i32 : i32, i32
  }
  func.func @transform_1(%arg0: i32, %arg1: i32) -> (i32, i32, i32) {
    %c0_i32 = arith.constant 0 : i32
    %c0_i32_0 = arith.constant 0 : i32
    %c0_i32_1 = arith.constant 0 : i32
    return %arg0, %c0_i32, %c0_i32_0 : i32, i32, i32
  }
  func.func @transform_2(%arg0: i32, %arg1: i32) -> (i32, i32) {
    %c0_i32 = arith.constant 0 : i32
    %c0_i32_0 = arith.constant 0 : i32
    return %arg1, %c0_i32 : i32, i32
  }
  func.func @transform_3(%arg0: i32, %arg1: i32) -> (i32, i32) {
    %c0_i32 = arith.constant 0 : i32
    %c0_i32_0 = arith.constant 0 : i32
    %c0_i32_1 = arith.constant 0 : i32
    return %c0_i32, %c0_i32_0 : i32, i32
  }
  func.func @transform_4(%arg0: i32, %arg1: i32) -> (i32, i32) {
    %c0_i32 = arith.constant 0 : i32
    %c0_i32_0 = arith.constant 0 : i32
    %c0_i32_1 = arith.constant 0 : i32
    return %c0_i32, %c0_i32_0 : i32, i32
  }
  func.func @transform_5(%arg0: i32, %arg1: i32) -> (i32, i32) {
    %c0_i32 = arith.constant 0 : i32
    %c0_i32_0 = arith.constant 0 : i32
    %c0_i32_1 = arith.constant 0 : i32
    return %c0_i32, %c0_i32_0 : i32, i32
  }
  func.func @transform_6(%arg0: i32, %arg1: i32) -> (i32, i32) {
    %c0_i32 = arith.constant 0 : i32
    %c0_i32_0 = arith.constant 0 : i32
    %c0_i32_1 = arith.constant 0 : i32
    return %c0_i32, %c0_i32_0 : i32, i32
  }
  func.func @transform_7(%arg0: i32, %arg1: i32) -> (i32, i32) {
    %c0_i32 = arith.constant 0 : i32
    %c0_i32_0 = arith.constant 0 : i32
    %c0_i32_1 = arith.constant 0 : i32
    return %c0_i32, %c0_i32_0 : i32, i32
  }
  func.func @transform_8(%arg0: i32, %arg1: i32) -> (i32, i32) {
    %c0_i32 = arith.constant 0 : i32
    %c0_i32_0 = arith.constant 0 : i32
    return %arg0, %c0_i32 : i32, i32
  }
}

</mosaic_0001>

<bundles_post_ra>
// kernel: tpu_custom_call.1
= control target key start
LH: loop header
LB: loop body
LE: loop exit
PB: predicated region body
PF: predicated region fallthrough
CT: control target
= control target key end

     0   :  { %s4422_s0 = inlined_call_operand.vmem [shape: s32[8,4], index: 0, kind: input, shape index: {}]   ;;  %s4423_s1 = inlined_call_operand.hbm [shape: f32[8,16,768], index: 1, kind: input, shape index: {}]   ;;  %s4424_s2 = inlined_call_operand.hbm [shape: bf16[2304,256], index: 2, kind: input, shape index: {}]   ;;  %s4425_s3 = inlined_call_operand.hbm [shape: f32[1,256], index: 3, kind: input, shape index: {}]   ;;  %s4426_s4 = inlined_call_operand.vmem [shape: bf16[256,64], index: 4, kind: input, shape index: {}]   ;;  %s4427_s5 = inlined_call_operand.hbm [shape: f32[1,64], index: 5, kind: input, shape index: {}]   ;;  %s4428_s6 = inlined_call_operand.vmem [shape: bf16[64,4], index: 6, kind: input, shape index: {}]   ;;  %s4429_s7 = inlined_call_operand.hbm [shape: f32[1,4], index: 7, kind: input, shape index: {}]   ;;  %s4430_s8 = inlined_call_operand.vmem [shape: f32[8,4], index: 8, kind: output, shape index: {}]  }
   0x1   :  { %4437 = sst [smem:[#allocation26_spill]] %s4423_s1 }
   0x2   :  { %4438 = sst [smem:[#allocation27_spill]] %s4425_s3 }
   0x3   :  { %13 = vsyncpa [#allocation4], 0 }
   0x4   :  { %14 = vsyncpa [#allocation6], 0 }
   0x5   :  { %16 = vsyncpa [#allocation6 + $0x1], 0 }
   0x6   :  { %17 = vsyncpa [#allocation9], 0  ;;  %s3499_s27 = smov 0   ;;  %s3501_s28 = smov 0  }
   0x7   :  { %s3503_s29 = smov 0   ;;  %s3505_s30 = smov 0  }
   0x8   :  { %s3507_s9 = smov 0   ;;  %s3509_s10 = smov 0  }
   0x9 LB: > { %s4434_s11 = sadd.s32 4294967295, %s3434_s10   ;;  %p107_p0 = scmp.ne.s32.totalorder %s3418_s28, %s3414_s27  ;;  %s3434_s10 = sphi %s3509_s10, %s23_s10   ;;  %s3430_s9 = sphi %s3507_s9, %s4478_s9   ;;  %s3426_s30 = sphi %s3505_s30, %s4477_s30   ;;  %s3422_s29 = sphi %s3503_s29, %s4476_s29   ;;  %s3418_s28 = sphi %s3501_s28, %s4475_s28   ;;  %s3414_s27 = sphi %s3499_s27, %s4474_s27  }
   0xa   : > { %p3531_p1 = scmp.eq.s32.totalorder %s4434_s11, 0  ;;  %p2776_p2 = scmp.ge.s32.totalorder %s3434_s10, 1 }
   0xb   : > { %p249_p3 = scmp.lt.s32.totalorder %s3434_s10, 4  ;;  %s3436_s15 = smov [#allocation7]  }
   0xc   : > { %s4439_s12 = scalar_select %p3531_p1, 1, 0 }
   0xd   : > { %p3539_p4 = por %p3531_p1, %p107_p0  ;;  %p3543_p5 = pnand %p2776_p2, %p249_p3 }
   0xe   : > { %s286_s16 = sshll.u32 %s3436_s15, 4  ;;  %s3437_s17 = smov [#allocation8]   ;;  %s287_s16 = int_to_ptr.vmem [resolvable:$true] %s286_s16 }
   0xf   : > { %s4440_s13 = scalar_select %p3539_p4, 1, 0 }
  0x10   : > { %p2976_p6 = pneg %p3543_p5  ;;  %s300_s18 = sshll.u32 %s3437_s17, 4  ;;  %s301_s18 = int_to_ptr.vmem [resolvable:$true] %s300_s18 }
  0x11   : > { %s3438_s20 = smov [#allocation3]   ;;  %s3251_s22 = scalar_lea.vmem %s287_s16, 32 }
  0x12   : > { %p3551_p7 = pnand %p2976_p6, %p3531_p1  ;;  %s272_s21 = sshll.u32 %s3438_s20, 4  ;;  %s273_s21 = int_to_ptr.vmem [resolvable:$true] %s272_s21 }
  0x13   : > { %p3252_p9 = scmp.ne.s32.totalorder %s287_s16, %s3251_s22  ;;  %p3259_p12 = scmp.lt.s32.totalorder %s287_s16, %s287_s16 }
  0x14   : > { %p3242_p8 = pneg %p3551_p7  ;;  %p3260_p13 = scmp.lt.s32.totalorder %s3251_s22, %s3251_s22 }
  0x16   : > { %p3254_p10 = pnand %p3252_p9, %p3242_p8  ;;  %p3261_p0 = por %p3260_p13, %p3259_p12 }
  0x18   : > { %p3255_p11 = pneg %p3254_p10 }
  0x1a   : > { %p3262_p2 = pnand %p3261_p0, %p3255_p11 }
  0x1c   : > { %3265 = shalt.err (!%p3262_p2)
}
  0x1d   : > { %s4443_s3 = sld [smem:[#allocation27_spill]]  ;;  %s3277_s25 = scalar_lea.vmem %s301_s18, 16 }
  0x1e   : > { %p3278_p3 = scmp.ne.s32.totalorder %s301_s18, %s3277_s25  ;;  %s3284_s26 = scalar_lea.vmem %s301_s18, 32 }
  0x1f   : > { %p3285_p9 = scmp.lt.s32.totalorder %s301_s18, %s301_s18  ;;  %p3286_p10 = scmp.lt.s32.totalorder %s3284_s26, %s3277_s25 }
  0x20   : > { %p3280_p6 = pnand %p3278_p3, %p3242_p8 }
  0x21   : > { %p3287_p1 = por %p3286_p10, %p3285_p9 }
  0x22   : > { %p3281_p4 = pneg %p3280_p6 }
  0x23   : > { %2982 = dma.hbm_to_vmem [thread:$0]  (!%p3551_p7), %s4443_s3, 32, %s287_s16, [#allocation6]  }
  0x24   : > { %p3288_p12 = pnand %p3287_p1, %p3281_p4 }
  0x26   : > { %3291 = shalt.err (!%p3288_p12)
}
  0x27   : > { %2985 = dma.hbm_to_vmem [thread:$0]  (!%p3551_p7), %s4427_s5, 16, %s301_s18, [#allocation9]  }
  0x28   : > { %s3303_s16 = scalar_lea.vmem %s273_s21, 12288  ;;  %p3311_p2 = scmp.lt.s32.totalorder %s273_s21, %s273_s21 }
  0x29   : > { %p3304_p11 = scmp.ne.s32.totalorder %s273_s21, %s3303_s16  ;;  %p3312_p3 = scmp.lt.s32.totalorder %s3303_s16, %s3303_s16 }
  0x2b   : > { %p3306_p13 = pnand %p3304_p11, %p3242_p8  ;;  %p3313_p6 = por %p3312_p3, %p3311_p2 }
  0x2d   : > { %p3307_p0 = pneg %p3306_p13 }
  0x2f   : > { %p3314_p9 = pnand %p3313_p6, %p3307_p0 }
  0x31   : > { %3317 = shalt.err (!%p3314_p9)
}
  0x32   : > { %s3439_s17 = smov 768   ;;  %s3440_s20 = smov 48  }
  0x33   : > { %s4444_s1 = sld [smem:[#allocation26_spill]]  ;;  %s3441_s18 = smov [#allocation10]  }
  0x34   : > { %s314_s24 = sshll.u32 %s3441_s18, 4  ;;  %s315_s24 = int_to_ptr.vmem [resolvable:$true] %s314_s24 }
  0x35   : > { %s3329_s25 = scalar_lea.vmem %s315_s24, 16  ;;  %s3336_s26 = scalar_lea.vmem %s315_s24, 32 }
  0x36   : > { %p3330_p1 = scmp.ne.s32.totalorder %s315_s24, %s3329_s25  ;;  %p3337_p12 = scmp.lt.s32.totalorder %s315_s24, %s315_s24 }
  0x37   : > { %p3338_p11 = scmp.lt.s32.totalorder %s3336_s26, %s3329_s25 }
  0x38   : > { %p3332_p4 = pnand %p3330_p1, %p3242_p8 }
  0x39   : > { %2979 = dma.hbm_to_vmem [thread:$0]  (!%p3551_p7), %s4444_s1, 12288, %s273_s21, [#allocation4], %s3439_s17, %s3439_s17, %s3440_s20  }
  0x3a   : > { %p3333_p10 = pneg %p3332_p4  ;;  %p3339_p13 = por %p3338_p11, %p3337_p12 }
  0x3c   : > { %p3340_p0 = pnand %p3339_p13, %p3333_p10 }
  0x3e   : > { %3343 = shalt.err (!%p3340_p0)
}
  0x3f   : > { %2988 = dma.hbm_to_vmem [thread:$0]  (!%p3551_p7), %s4429_s7, 16, %s315_s24, [#allocation9]  }
  0x40   : > { %s32_s21 = sadd.s32 1, %s3430_s9  ;;  %s94_s16 = sadd.s32 1, %s3422_s29 }
  0x41   : > { %p33_p8 = scmp.ge.s32.totalorder %s32_s21, 3  ;;  %p101_p2 = scmp.ne.s32.totalorder %s3422_s29, %s3418_s28 }
  0x42   : > { %p102_p3 = scmp.eq.s32.totalorder %s3434_s10, 0  ;;  %p2997_p6 = scmp.lt.s32.totalorder %s3434_s10, 3 }
  0x43   : > { %s4480_s21 = smov (%p33_p8, %s32_s21), 0  ;;  %s325_s19 = sand.u32 1, %s3434_s10  }
  0x44   : > { %p103_p9 = por %p102_p3, %p101_p2  ;;  %s91_s17 = ssub.s32 %s3430_s9, %s4480_s21 }
  0x45   : > { %p92_p1 = scmp.eq.s32.totalorder %s91_s17, 0  ;;  %s327_s20 = sand.u32 1, %s3422_s29  }
  0x46   : > { %s2956_s22 = smul.u32 768, %s327_s20  ;;  %p3601_p4 = pnand %p2997_p6, %p103_p9 }
  0x47   : > { %s3606_s18 = scalar_select %p92_p1, %s3422_s29, %s94_s16  }
  0x48   : > { %s2916_s24 = smul.u32 12288, %s3430_s9  ;;  %s329_s25 = scalar_lea.vmem [#allocation5], %s2956_s22 }
  0x49   : > { %s337_s26 = sshll.u32 %s329_s25, 4  ;;  %s326_s1 = scalar_lea.sflag [#allocation6], %s325_s19  ;;  %s338_s26 = int_to_ptr.vmem [resolvable:$true] %s337_s26 }
  0x4a   : > { %s336_s11 = scalar_lea.hbm %s4424_s2, %s2916_s24  ;;  %p3346_p7 = pneg %p3601_p4 }
  0x4b   : > { %s3357_s17 = scalar_lea.vmem %s338_s26, 12288  ;;  %s3442_s20 = smov [#allocation5]  }
  0x4c   : > { %p3358_p10 = scmp.ne.s32.totalorder %s338_s26, %s3357_s17  ;;  %s3362_s3 = sshll.u32 %s3442_s20, 4  ;;  %s3363_s3 = int_to_ptr.vmem [resolvable:$false] %s3362_s3 }
  0x4d   : > { %s3364_s16 = scalar_lea.vmem %s3363_s3, 24576  ;;  %p3365_p13 = scmp.lt.s32.totalorder %s338_s26, %s3363_s3 }
  0x4e   : > { %p3360_p12 = pnand %p3358_p10, %p3346_p7  ;;  %p3366_p0 = scmp.lt.s32.totalorder %s3364_s16, %s3357_s17 }
  0x50   : > { %p3361_p11 = pneg %p3360_p12  ;;  %p3367_p8 = por %p3366_p0, %p3365_p13 }
  0x52   : > { %p3368_p2 = pnand %p3367_p8, %p3361_p11 }
  0x54   : > { %3371 = shalt.err (!%p3368_p2)
}
  0x55   : > { %s3443_s22 = smov 128   ;;  %s3444_s24 = smov 8  }
  0x56   : > { %2992 = dma.hbm_to_vmem [thread:$0]  (!%p3601_p4), %s336_s11, 12288, %s338_s26, %s326_s1, %s3443_s22, %s3443_s22, %s3444_s24  }
  0x57   : > { %349 = sbr.rel (%p3543_p5) target bundleno = 1644 (0x66c), region = 52 }
  0x5c   : > { %p4446_p3 = scmp.ne.s32.totalorder %s4439_s12, 0 }
  0x5e   : > { %3397 = dma.done.wait (%p4446_p3), [#allocation4], 12288  }
  0x5f   : > { %3399 = vsyncadd (%p4446_p3), [#allocation4], 4294955008  ;;  %s4447_s3 = sadd.s32 4294967295, %s3434_s10   ;;  %s357_s25 = sand.u32 1, %s3418_s28  }
  0x60   : > { %s355_s19 = sand.u32 1, %s4447_s3   ;;  %s2957_s27 = smul.u32 768, %s357_s25 }
  0x61   : > { %s356_s15 = scalar_lea.sflag [#allocation6], %s355_s19  ;;  %p4448_p6 = scmp.ne.s32.totalorder %s4440_s13, 0 }
  0x62   : > { %s3625_s17 = scalar_lea.vmem [#allocation5], %s2957_s27 }
  0x63   : > { %3401 = dma.done.wait (%p4448_p6), %s356_s15, 12288  }
  0x64   : > { %3403 = vsyncadd (%p4448_p6), %s356_s15, 4294955008 }
  0x65   : > { %3405 = dma.done.wait (%p4446_p3), [#allocation6], 32  }
  0x66   : > { %3407 = vsyncadd (%p4446_p3), [#allocation6], 4294967264 }
  0x67   : > { %3409 = dma.done.wait (%p4446_p3), [#allocation9], 32  }
  0x68   : > { %3411 = vsyncadd (%p4446_p3), [#allocation9], 4294967264  ;;  %p418_p5 = scmp.eq.s32.totalorder %s3426_s30, 0  ;;  %p2790_p9 = scmp.ne.s32.totalorder %s3426_s30, 0 }
  0x6a   : > { %421 = sbr.rel (%p2790_p9) target bundleno = 113 (0x71), region = 76 }
  0x6f   : > { %v3445_v0 = vmov 0.0  }
  0x70   : > { %422 = vst [vmem:[#allocation2] sm:$0xff] %v3445_v0  ;;  %423 = vst [vmem:[#allocation2 + $0x8] sm:$0xff] %v3445_v0 }
  0x71 PF: > { %p425_p1 = scmp.eq.s32.totalorder %s3426_s30, 1  ;;  %v424_v1 = vld [vmem:[%s4422_s0] sm:$0xff]  ;;  %v3446_v2 = vmov 0   ;;  %s3447_s12 = smov 126   ;;  %v440_v6 = vlaneseq  ;;  %v3448_v7 = vmov 1966171168  }
  0x72   : > { %3068 = vset.pattern.permute.xlu1 %v3446_v2  ;;  %3067 = vset.pattern.permute.xlu0 %v3446_v2  ;;  %v445_v8 = vunpack.c.l.s4 %v3448_v7  ;;  %s430_s14 = scalar_select %p418_p5, 1, 0 }
  0x73   : > { %s426_s13 = scalar_select %p425_p1, 1, 0  ;;  %v3649_v9 = vshrl.u32 %v440_v6, 7 }
  0x74   : > { %v446_v10 = vunpack.c.0.s8 %v445_v8  ;;  %v431_v11 = vstv %s430_s14  ;;  %s3449_s23 = smov 1   ;;  %s3450_s26 = smov 127  }
  0x75   : > { %v427_v3 = vstv %s426_s13  ;;  %4449 = vst [vmem:[#allocation15_spill] sm:$0xff] %v3649_v9  ;;  %vm432_vm1 = vcmp.eq.s32.totalorder %v431_v11, 1  ;;  %v3658_v17 = vsub.s32 0, %v3649_v9  ;;  %v3661_v22 = vadd.s32 8, %v3649_v9  ;;  %p2887_p4 = scmp.ne.s32.totalorder %s3426_s30, 2 }
  0x76   : > { %vm428_vm0 = vcmp.eq.s32.totalorder %v427_v3, 1  ;;  %v449_v12 = vsub.s32 %v446_v10, %v3649_v9 }
  0x77   : > { %v436_v4 = vsel %vm428_vm0, %v424_v1, 1  ;;  %v429_v5 = vsel %vm428_vm0, %v424_v1, 0  ;;  %4450 = vst [vmem:[#allocation16_spill] sm:$0xff] %v3658_v17 }
  0x78   : > { %437 = vrot.lane.b32.xlu0 %v436_v4, %s3447_s12 }
  0x7c   : > { %433 = vrot.lane.b32.xlu0 %v429_v5, %s3447_s12 }
  0xea   : > { %v438_v13 = vpop.permute.xlu0 %437 }
  0xeb   : > { %v3652_v14 = vsel %vm432_vm1, %v424_v1, %v438_v13  ;;  %v3070_v13 = vld [vmem:[%s3625_s17 + $0x74] ss:$8 sps:$4 sm:$0xff]  }
  0xec   : > { %v540_v15 = vcombine.high %v3652_v14, %v3652_v14  ;;  %v547_v16 = vrot.slane %v3652_v14, %v449_v12  ;;  %2224 = vmatprep.subr.bf16.mxu0 %v3070_v13  ;;  %v3103_v13 = vld [vmem:[%s3625_s17 + $0x124] ss:$8 sps:$4 sm:$0xff]  }
  0xee   : > { %v554_v18 = vrot.slane %v540_v15, %v449_v12  ;;  %v555_v19 = vcombine.high %v547_v16, %v547_v16  ;;  %v563_v20 = vrot.slane %v547_v16, %v449_v12  ;;  %v434_v21 = vpop.permute.xlu0 %433  ;;  %v3072_v15 = vld [vmem:[%s3625_s17 + $0x70] ss:$8 sps:$4 sm:$0xff]   ;;  %v3073_v16 = vld [vmem:[%s3625_s17 + $0x174] ss:$8 sps:$4 sm:$0xff]  }
  0xef   : > { %v435_v23 = vsel %vm432_vm1, %v424_v1, %v434_v21  ;;  %2265 = vmatprep.subr.bf16.mxu1 %v3073_v16  ;;  %2225 = vmatpush1.bf16.msra.mxu0 %v3072_v15  ;;  %v3105_v15 = vld [vmem:[%s3625_s17 + $0x120] ss:$8 sps:$4 sm:$0xff]   ;;  %v3106_v16 = vld [vmem:[%s3625_s17 + $0x14] ss:$8 sps:$4 sm:$0xff]  }
  0xf0   : > { %1325 = vrot.lane.b32.xlu1 %v435_v23, %s3449_s23  ;;  %v443_v24 = vcombine.high %v435_v23, %v435_v23  ;;  %v450_v25 = vrot.slane %v435_v23, %v449_v12  ;;  %v592_v26 = vrot.slane %v563_v20, %v3658_v17  ;;  %v577_v27 = vrot.slane %v555_v19, %v449_v12  ;;  %v3076_v19 = vld [vmem:[%s3625_s17 + $0x64] ss:$8 sps:$4 sm:$0xff]  }
  0xf1   : > { %v585_v28 = vcombine.high %v563_v20, %v563_v20  ;;  %v570_v31 = vrot.slane %v554_v18, %v449_v12  ;;  %v556_v39 = vcombine.high %v554_v18, %v554_v18  ;;  %v3075_v18 = vld [vmem:[%s3625_s17 + $0x170] ss:$8 sps:$4 sm:$0xff]   ;;  %2226 = vmatprep.subr.bf16.mxu0 %v3076_v19  ;;  %v3109_v19 = vld [vmem:[%s3625_s17 + $0x114] ss:$8 sps:$4 sm:$0xff]  }
  0xf2   : > { %v457_v29 = vrot.slane %v443_v24, %v449_v12  ;;  %v466_v30 = vrot.slane %v450_v25, %v449_v12  ;;  %vm622_vm2 = vcmp.lt.s32.totalorder %v3661_v22, %v592_v26  ;;  %vm621_vm3 = vcmp.lt.s32.totalorder %v3649_v9, %v592_v26  ;;  %2266 = vmatpush1.bf16.msra.mxu1 %v3075_v18  ;;  %v3108_v18 = vld [vmem:[%s3625_s17 + $0x10] ss:$8 sps:$4 sm:$0xff]  }
  0xf3   : > { %v638_v32 = vsel %vm622_vm2, 1, %v3446_v2  ;;  %v596_v33 = vrot.slane %v577_v27, %v3658_v17  ;;  %v637_v34 = vsel %vm621_vm3, 1, %v3446_v2  ;;  %v600_v35 = vrot.slane %v585_v28, %v3658_v17 }
  0xf4   : > { %655 = vrot.lane.b32.xlu0 %v638_v32, %s3450_s26  ;;  %653 = vrot.lane.b32.xlu1 %v637_v34, %s3450_s26  ;;  %v608_v36 = vrot.slane %v570_v31, %v3658_v17  ;;  %v587_v38 = vcombine.high %v577_v27, %v577_v27  ;;  %v3680_v41 = vrot.slane %v466_v30, %v3658_v17 }
  0xf5   : > { %vm624_vm4 = vcmp.lt.s32.totalorder %v3661_v22, %v596_v33  ;;  %vm623_vm5 = vcmp.lt.s32.totalorder %v3649_v9, %v596_v33  ;;  %vm626_vm6 = vcmp.lt.s32.totalorder %v3661_v22, %v600_v35  ;;  %vm625_vm7 = vcmp.lt.s32.totalorder %v3649_v9, %v600_v35  ;;  %v3078_v35 = vld [vmem:[%s3625_s17 + $0x60] ss:$8 sps:$4 sm:$0xff]  }
  0xf6   : > { %v640_v37 = vsel %vm624_vm4, 1, %v3446_v2  ;;  %v639_v40 = vsel %vm623_vm5, 1, %v3446_v2  ;;  %v458_v42 = vcombine.high %v450_v25, %v450_v25  ;;  %v459_v43 = vcombine.high %v457_v29, %v457_v29  ;;  %2227 = vmatpush1.bf16.msra.mxu0 %v3078_v35  ;;  %v3132_v35 = vld [vmem:[%s3625_s17 + $0xd0] ss:$8 sps:$4 sm:$0xff]  }
  0xf7   : > { %vm630_vm8 = vcmp.lt.s32.totalorder %v3661_v22, %v608_v36  ;;  %v642_v44 = vsel %vm626_vm6, 1, %v3446_v2  ;;  %vm629_vm9 = vcmp.lt.s32.totalorder %v3649_v9, %v608_v36  ;;  %v604_v45 = vrot.slane %v587_v38, %v3658_v17  ;;  %v3079_v36 = vld [vmem:[%s3625_s17 + $0x164] ss:$8 sps:$4 sm:$0xff]  }
  0xf8   : > { %659 = vrot.lane.b32.xlu0 %v640_v37, %s3450_s26  ;;  %657 = vrot.lane.b32.xlu1 %v639_v40, %s3450_s26  ;;  %vm525_vm10 = vcmp.ge.s32.totalorder %v3661_v22, %v3680_v41  ;;  %v641_v46 = vsel %vm625_vm7, 1, %v3446_v2  ;;  %v584_v47 = vrot.slane %v556_v39, %v449_v12  ;;  %v646_v48 = vsel %vm630_vm8, 1, %v3446_v2  ;;  %v3081_v37 = vld [vmem:[%s3625_s17 + $0x160] ss:$8 sps:$4 sm:$0xff]   ;;  %v3082_v40 = vld [vmem:[%s3625_s17 + $0x54] ss:$8 sps:$4 sm:$0xff]  }
  0xf9   : > { %v645_v49 = vsel %vm629_vm9, 1, %v3446_v2  ;;  %v586_v50 = vcombine.high %v570_v31, %v570_v31  ;;  %v480_v51 = vrot.slane %v458_v42, %v449_v12  ;;  %v488_v52 = vcombine.high %v466_v30, %v466_v30  ;;  %2267 = vmatprep.subr.bf16.mxu1 %v3079_v36  ;;  %2228 = vmatprep.subr.bf16.mxu0 %v3082_v40  ;;  %v3085_v42 = vld [vmem:[%s3625_s17 + $0x154] ss:$8 sps:$4 sm:$0xff]   ;;  %v3141_v40 = vld [vmem:[%s3625_s17 + $0x1c0] ss:$8 sps:$4 sm:$0xff]  }
  0xfa   : > { %vm628_vm11 = vcmp.lt.s32.totalorder %v3661_v22, %v604_v45  ;;  %vm627_vm12 = vcmp.lt.s32.totalorder %v3649_v9, %v604_v45  ;;  %v473_v53 = vrot.slane %v457_v29, %v449_v12  ;;  %v487_v54 = vrot.slane %v459_v43, %v449_v12  ;;  %2268 = vmatpush1.bf16.msra.mxu1 %v3081_v37  ;;  %v3133_v36 = vld [vmem:[%s3625_s17 + $0x1d4] ss:$8 sps:$4 sm:$0xff]   ;;  %v3135_v37 = vld [vmem:[%s3625_s17 + $0x1d0] ss:$8 sps:$4 sm:$0xff]  }
  0xfb   : > { %v612_v55 = vrot.slane %v584_v47, %v3658_v17  ;;  %v3700_v56 = vrot.slane %v480_v51, %v3658_v17  ;;  %v3703_v57 = vrot.slane %v488_v52, %v3658_v17  ;;  %v490_v58 = vcombine.high %v480_v51, %v480_v51  ;;  %2269 = vmatprep.subr.bf16.mxu1 %v3085_v42  ;;  %v3087_v52 = vld [vmem:[%s3625_s17 + $0x150] ss:$8 sps:$4 sm:$0xff]  }
  0xfc   : > { %663 = vrot.lane.b32.xlu0 %v642_v44, %s3450_s26  ;;  %661 = vrot.lane.b32.xlu1 %v641_v46, %s3450_s26  ;;  %v3707_v59 = vrot.slane %v473_v53, %v3658_v17  ;;  %v3710_v60 = vrot.slane %v487_v54, %v3658_v17  ;;  %v489_v61 = vcombine.high %v473_v53, %v473_v53  ;;  %v644_v63 = vsel %vm628_vm11, 1, %v3446_v2  ;;  %v3144_v42 = vld [vmem:[%s3625_s17 + $0xb0] ss:$8 sps:$4 sm:$0xff]  }
  0xfd   : > { %v491_v62 = vcombine.high %v487_v54, %v487_v54  ;;  %v588_v0 = vcombine.high %v584_v47, %v584_v47  ;;  %vm527_vm13 = vcmp.ge.s32.totalorder %v3661_v22, %v3700_v56  ;;  %vm529_vm14 = vcmp.ge.s32.totalorder %v3661_v22, %v3703_v57  ;;  %v3088_v54 = vld [vmem:[%s3625_s17 + $0x44] ss:$8 sps:$4 sm:$0xff]  }
  0xfe   : > { %v643_v1 = vsel %vm627_vm12, 1, %v3446_v2  ;;  %v616_v3 = vrot.slane %v586_v50, %v3658_v17  ;;  %vm533_vm15 = vcmp.ge.s32.totalorder %v3661_v22, %v3707_v59  ;;  %v3724_v4 = vrot.slane %v490_v58, %v3658_v17  ;;  %2270 = vmatpush1.bf16.msra.mxu1 %v3087_v52  ;;  %v3090_v58 = vld [vmem:[%s3625_s17 + $0x40] ss:$8 sps:$4 sm:$0xff]   ;;  %v3159_v52 = vld [vmem:[%s3625_s17 + $0x190] ss:$8 sps:$4 sm:$0xff]  }
  0xff   : > { %vm632_vm0 = vcmp.lt.s32.totalorder %v3661_v22, %v612_v55  ;;  %vm535_vm1 = vcmp.ge.s32.totalorder %v3661_v22, %v3710_v60  ;;  %v3731_v5 = vrot.slane %v489_v61, %v3658_v17  ;;  %v3734_v6 = vrot.slane %v491_v62, %v3658_v17  ;;  %v3093_v62 = vld [vmem:[%s3625_s17 + $0x140] ss:$8 sps:$4 sm:$0xff]  }
 0x100   : > { %671 = vrot.lane.b32.xlu0 %v646_v48, %s3450_s26  ;;  %669 = vrot.lane.b32.xlu1 %v645_v49, %s3450_s26  ;;  %vm631_vm2 = vcmp.lt.s32.totalorder %v3649_v9, %v612_v55  ;;  %vm531_vm3 = vcmp.ge.s32.totalorder %v3661_v22, %v3724_v4  ;;  %v648_v7 = vsel %vm632_vm0, 1, %v3446_v2  ;;  %vm634_vm6 = vcmp.lt.s32.totalorder %v3661_v22, %v616_v3 }
 0x101   : > { %vm537_vm4 = vcmp.ge.s32.totalorder %v3661_v22, %v3731_v5  ;;  %vm539_vm5 = vcmp.ge.s32.totalorder %v3661_v22, %v3734_v6  ;;  %v647_v8 = vsel %vm631_vm2, 1, %v3446_v2  ;;  %vm633_vm7 = vcmp.lt.s32.totalorder %v3649_v9, %v616_v3 }
 0x102   : > { %v620_v10 = vrot.slane %v588_v0, %v3658_v17  ;;  %v650_v11 = vsel %vm634_vm6, 1, %v3446_v2  ;;  %v649_v12 = vsel %vm633_vm7, 1, %v3446_v2  ;;  %vm524_vm12 = vcmp.ge.s32.totalorder %v3649_v9, %v3680_v41  ;;  %v3084_v41 = vld [vmem:[%s3625_s17 + $0x50] ss:$8 sps:$4 sm:$0xff]  }
 0x103   : > { %2229 = vmatpush1.bf16.msra.mxu0 %v3084_v41  ;;  %v3142_v41 = vld [vmem:[%s3625_s17 + $0xb4] ss:$8 sps:$4 sm:$0xff]  }
 0x104   : > { %667 = vrot.lane.b32.xlu0 %v644_v63, %s3450_s26  ;;  %665 = vrot.lane.b32.xlu1 %v643_v1, %s3450_s26  ;;  %vm636_vm8 = vcmp.lt.s32.totalorder %v3661_v22, %v620_v10  ;;  %vm635_vm9 = vcmp.lt.s32.totalorder %v3649_v9, %v620_v10  ;;  %v3094_v63 = vld [vmem:[%s3625_s17 + $0x34] ss:$8 sps:$4 sm:$0xff]   ;;  %v3451_v10 = vmov 1   ;;  %v3099_v22 = vld [vmem:[%s3625_s17 + $0x130] ss:$8 sps:$4 sm:$0xff]  }
 0x105   : > { %v652_v20 = vsel %vm636_vm8, 1, %v3446_v2  ;;  %v651_v21 = vsel %vm635_vm9, 1, %v3446_v2  ;;  %vm526_vm8 = vcmp.ge.s32.totalorder %v3649_v9, %v3700_v56  ;;  %2230 = vmatprep.subr.bf16.mxu0 %v3088_v54  ;;  %v3163_v54 = vld [vmem:[%s3625_s17 + $0x184] ss:$8 sps:$4 sm:$0xff]  }
 0x107   : > { %2231 = vmatpush1.bf16.msra.mxu0 %v3090_v58  ;;  %v724_v58 = vld [vmem:[#allocation3 + $0x38] sm:$0xff] }
 0x108   : > { %675 = vrot.lane.b32.xlu0 %v648_v7, %s3450_s26  ;;  %673 = vrot.lane.b32.xlu1 %v647_v8, %s3450_s26 }
 0x109   : > { %2232 = vmatprep.subr.bf16.mxu0 %v3094_v63  ;;  %v728_v63 = vld [vmem:[#allocation3 + $0x58] sm:$0xff] }
 0x10c   : > { %679 = vrot.lane.b32.xlu0 %v650_v11, %s3450_s26  ;;  %677 = vrot.lane.b32.xlu1 %v649_v12, %s3450_s26  ;;  %v3096_v11 = vld [vmem:[%s3625_s17 + $0x30] ss:$8 sps:$4 sm:$0xff]   ;;  %v3097_v12 = vld [vmem:[%s3625_s17 + $0x134] ss:$8 sps:$4 sm:$0xff]  }
 0x10d   : > { %2233 = vmatpush1.bf16.msra.mxu0 %v3096_v11  ;;  %v721_v11 = vld [vmem:[#allocation3 + $0x20] sm:$0xff] }
 0x110   : > { %683 = vrot.lane.b32.xlu0 %v652_v20, %s3450_s26  ;;  %681 = vrot.lane.b32.xlu1 %v651_v21, %s3450_s26  ;;  %v3111_v20 = vld [vmem:[%s3625_s17 + $0x110] ss:$8 sps:$4 sm:$0xff]   ;;  %v3112_v21 = vld [vmem:[%s3625_s17 + $0x4] ss:$8 sps:$4 sm:$0xff]  }
 0x162   : > { %v1326_v23 = vpop.permute.xlu1 %1325 }
 0x163   : > { %v1327_v34 = vsub.s32 %v3652_v14, %v1326_v23  ;;  %v3114_v23 = vld [vmem:[%s3625_s17] ss:$8 sps:$4 sm:$0xff]  }
 0x166   : > { %v656_v24 = vpop.permute.xlu0 %655  ;;  %v654_v25 = vpop.permute.xlu1 %653 }
 0x167   : > { %vm686_vm11 = vcmp.ne.s32.totalorder %v656_v24, 0  ;;  %vm685_vm0 = vcmp.ne.s32.totalorder %v654_v25, 0  ;;  %v3115_v24 = vld [vmem:[%s3625_s17 + $0x104] ss:$8 sps:$4 sm:$0xff]   ;;  %v3117_v25 = vld [vmem:[%s3625_s17 + $0x100] ss:$8 sps:$4 sm:$0xff]  }
 0x168   : > { %vm702_vm2 = vmand %vm525_vm10, %vm686_vm11 }
 0x169   : > { %vm701_vm6 = vmand %vm524_vm12, %vm685_vm0  ;;  %v814_v26 = vsel %vm702_vm2, 1, %v3446_v2  ;;  %vm528_vm12 = vcmp.ge.s32.totalorder %v3649_v9, %v3703_v57 }
 0x16a   : > { %v813_v27 = vsel %vm701_vm6, 1, %v3446_v2  ;;  %833 = vperm.xlu1 %3068, %v814_v26   ;;  %v660_v28 = vpop.permute.xlu0 %659  ;;  %v658_v29 = vpop.permute.xlu1 %657  ;;  %v3118_v26 = vld [vmem:[%s3625_s17 + $0xf4] ss:$8 sps:$4 sm:$0xff]  }
 0x16b   : > { %830 = vperm.xlu0 %3067, %v813_v27   ;;  %vm688_vm7 = vcmp.ne.s32.totalorder %v660_v28, 0  ;;  %vm687_vm9 = vcmp.ne.s32.totalorder %v658_v29, 0  ;;  %v3120_v27 = vld [vmem:[%s3625_s17 + $0xf0] ss:$8 sps:$4 sm:$0xff]   ;;  %v3121_v28 = vld [vmem:[%s3625_s17 + $0x1f4] ss:$8 sps:$4 sm:$0xff]  }
 0x16c   : > { %vm704_vm10 = vmand %vm527_vm13, %vm688_vm7  ;;  %vm1328_vm7 = vcmp.gt.s32.totalorder %v1327_v34, 1  ;;  %v3123_v29 = vld [vmem:[%s3625_s17 + $0x1f0] ss:$8 sps:$4 sm:$0xff]  }
 0x16d   : > { %vm703_vm11 = vmand %vm526_vm8, %vm687_vm9  ;;  %v816_v30 = vsel %vm704_vm10, 1, %v3446_v2  ;;  %vm532_vm8 = vcmp.ge.s32.totalorder %v3649_v9, %v3707_v59  ;;  %v1329_v46 = vsel %vm1328_vm7, %v1327_v34, 1  ;;  %v3091_v59 = vld [vmem:[%s3625_s17 + $0x144] ss:$8 sps:$4 sm:$0xff]   ;;  %v3130_v34 = vld [vmem:[%s3625_s17 + $0xd4] ss:$8 sps:$4 sm:$0xff]  }
 0x16e   : > { %v815_v31 = vsel %vm703_vm11, 1, %v3446_v2  ;;  %v664_v32 = vpop.permute.xlu0 %663  ;;  %v662_v33 = vpop.permute.xlu1 %661  ;;  %v1330_v48 = vcvt.s32.f32 %v1329_v46  ;;  %2271 = vmatprep.subr.bf16.mxu1 %v3091_v59  ;;  %v3151_v46 = vld [vmem:[%s3625_s17 + $0x1a4] ss:$8 sps:$4 sm:$0xff]  }
 0x16f   : > { %836 = vperm.xlu1 %3068, %v815_v31   ;;  %839 = vperm.xlu0 %3067, %v816_v30   ;;  %vm689_vm0 = vcmp.ne.s32.totalorder %v662_v33, 0  ;;  %vm690_vm2 = vcmp.ne.s32.totalorder %v664_v32, 0  ;;  %v3124_v30 = vld [vmem:[%s3625_s17 + $0xe4] ss:$8 sps:$4 sm:$0xff]   ;;  %v3126_v31 = vld [vmem:[%s3625_s17 + $0xe0] ss:$8 sps:$4 sm:$0xff]  }
 0x170   : > { %vm705_vm13 = vmand %vm528_vm12, %vm689_vm0  ;;  %vm530_vm12 = vcmp.ge.s32.totalorder %v3649_v9, %v3724_v4  ;;  %3214 = vrcp.f32 %v1330_v48  ;;  %2272 = vmatpush1.bf16.msra.mxu1 %v3093_v62  ;;  %v3127_v32 = vld [vmem:[%s3625_s17 + $0x1e4] ss:$8 sps:$4 sm:$0xff]   ;;  %v3129_v33 = vld [vmem:[%s3625_s17 + $0x1e0] ss:$8 sps:$4 sm:$0xff]  }
 0x171   : > { %v817_v38 = vsel %vm705_vm13, 1, %v3446_v2  ;;  %vm706_vm6 = vmand %vm529_vm14, %vm690_vm2  ;;  %2273 = vmatprep.subr.bf16.mxu1 %v3097_v12  ;;  %v3153_v48 = vld [vmem:[%s3625_s17 + $0x1a0] ss:$8 sps:$4 sm:$0xff]   ;;  %v727_v62 = vld [vmem:[#allocation3 + $0x50] sm:$0xff] }
 0x172   : > { %v672_v39 = vpop.permute.xlu0 %671  ;;  %v670_v14 = vpop.permute.xlu1 %669  ;;  %v818_v44 = vsel %vm706_vm6, 1, %v3446_v2  ;;  %vm534_vm6 = vcmp.ge.s32.totalorder %v3649_v9, %v3710_v60  ;;  %v725_v59 = vld [vmem:[#allocation3 + $0x40] sm:$0xff]  ;;  %v722_v12 = vld [vmem:[#allocation3 + $0x28] sm:$0xff] }
 0x173   : > { %842 = vperm.xlu1 %3068, %v817_v38   ;;  %vm693_vm9 = vcmp.ne.s32.totalorder %v670_v14, 0  ;;  %vm694_vm10 = vcmp.ne.s32.totalorder %v672_v39, 0  ;;  %v3136_v38 = vld [vmem:[%s3625_s17 + $0xc4] ss:$8 sps:$4 sm:$0xff]   ;;  %v3138_v39 = vld [vmem:[%s3625_s17 + $0xc0] ss:$8 sps:$4 sm:$0xff]  }
 0x174   : > { %vm709_vm11 = vmand %vm532_vm8, %vm693_vm9  ;;  %2274 = vmatpush1.bf16.msra.mxu1 %v3099_v22  ;;  %v3139_v14 = vld [vmem:[%s3625_s17 + $0x1c4] ss:$8 sps:$4 sm:$0xff]  }
 0x175   : > { %v821_v43 = vsel %vm709_vm11, 1, %v3446_v2  ;;  %vm710_vm14 = vmand %vm533_vm15, %vm694_vm10  ;;  %vm536_vm10 = vcmp.ge.s32.totalorder %v3649_v9, %v3731_v5  ;;  %2275 = vmatprep.subr.bf16.mxu1 %v3103_v13 }
 0x176   : > { %v668_v45 = vpop.permute.xlu0 %667  ;;  %v666_v47 = vpop.permute.xlu1 %665  ;;  %854 = vperm.xlu0 %3067, %v821_v43   ;;  %v822_v50 = vsel %vm710_vm14, 1, %v3446_v2  ;;  %v3145_v43 = vld [vmem:[%s3625_s17 + $0x1b4] ss:$8 sps:$4 sm:$0xff]  }
 0x177   : > { %845 = vperm.xlu1 %3068, %v818_v44   ;;  %vm691_vm0 = vcmp.ne.s32.totalorder %v666_v47, 0  ;;  %vm692_vm2 = vcmp.ne.s32.totalorder %v668_v45, 0  ;;  %v3147_v44 = vld [vmem:[%s3625_s17 + $0x1b0] ss:$8 sps:$4 sm:$0xff]   ;;  %v3148_v45 = vld [vmem:[%s3625_s17 + $0xa4] ss:$8 sps:$4 sm:$0xff]  }
 0x178   : > { %vm707_vm13 = vmand %vm530_vm12, %vm691_vm0  ;;  %vm538_vm0 = vcmp.ge.s32.totalorder %v3649_v9, %v3734_v6  ;;  %v3100_v6 = vld [vmem:[%s3625_s17 + $0x24] ss:$8 sps:$4 sm:$0xff]   ;;  %2276 = vmatpush1.bf16.msra.mxu1 %v3105_v15  ;;  %v3150_v47 = vld [vmem:[%s3625_s17 + $0xa0] ss:$8 sps:$4 sm:$0xff]  }
 0x179   : > { %v819_v49 = vsel %vm707_vm13, 1, %v3446_v2  ;;  %vm708_vm15 = vmand %vm531_vm3, %vm692_vm2  ;;  %2234 = vmatprep.subr.bf16.mxu0 %v3100_v6  ;;  %2277 = vmatprep.subr.bf16.mxu1 %v3109_v19 }
 0x17a   : > { %v676_v51 = vpop.permute.xlu0 %675  ;;  %v674_v53 = vpop.permute.xlu1 %673  ;;  %848 = vperm.xlu0 %3067, %v819_v49   ;;  %v820_v56 = vsel %vm708_vm15, 1, %v3446_v2  ;;  %v3154_v49 = vld [vmem:[%s3625_s17 + $0x94] ss:$8 sps:$4 sm:$0xff]  }
 0x17b   : > { %857 = vperm.xlu1 %3068, %v822_v50   ;;  %vm695_vm7 = vcmp.ne.s32.totalorder %v674_v53, 0  ;;  %vm696_vm8 = vcmp.ne.s32.totalorder %v676_v51, 0  ;;  %v3157_v50 = vld [vmem:[%s3625_s17 + $0x194] ss:$8 sps:$4 sm:$0xff]   ;;  %v3156_v51 = vld [vmem:[%s3625_s17 + $0x90] ss:$8 sps:$4 sm:$0xff]  }
 0x17c   : > { %vm711_vm9 = vmand %vm534_vm6, %vm695_vm7  ;;  %2278 = vmatpush1.bf16.msra.mxu1 %v3111_v20  ;;  %v3160_v53 = vld [vmem:[%s3625_s17 + $0x84] ss:$8 sps:$4 sm:$0xff]  }
 0x17d   : > { %v823_v55 = vsel %vm711_vm9, 1, %v3446_v2  ;;  %vm712_vm3 = vmand %vm535_vm1, %vm696_vm8  ;;  %v3215_v8 = vpop.eup %3214  ;;  %2279 = vmatprep.subr.bf16.mxu1 %v3115_v24 }
 0x17e   : > { %v680_v57 = vpop.permute.xlu0 %679  ;;  %v678_v61 = vpop.permute.xlu1 %677  ;;  %860 = vperm.xlu0 %3067, %v823_v55   ;;  %v824_v1 = vsel %vm712_vm3, 1, %v3446_v2  ;;  %v3162_v55 = vld [vmem:[%s3625_s17 + $0x80] ss:$8 sps:$4 sm:$0xff]  }
 0x17f   : > { %851 = vperm.xlu1 %3068, %v820_v56   ;;  %vm697_vm11 = vcmp.ne.s32.totalorder %v678_v61, 0  ;;  %vm698_vm14 = vcmp.ne.s32.totalorder %v680_v57, 0  ;;  %v3165_v56 = vld [vmem:[%s3625_s17 + $0x180] ss:$8 sps:$4 sm:$0xff]   ;;  %v723_v57 = vld [vmem:[#allocation3 + $0x30] sm:$0xff] }
 0x180   : > { %vm713_vm12 = vmand %vm536_vm10, %vm697_vm11  ;;  %2280 = vmatpush1.bf16.msra.mxu1 %v3117_v25  ;;  %v726_v61 = vld [vmem:[#allocation3 + $0x48] sm:$0xff] }
 0x181   : > { %v825_v0 = vsel %vm713_vm12, 1, %v3446_v2  ;;  %vm714_vm1 = vmand %vm537_vm4, %vm698_vm14  ;;  %2281 = vmatprep.subr.bf16.mxu1 %v3121_v28 }
 0x182   : > { %v684_v60 = vpop.permute.xlu0 %683  ;;  %v682_v3 = vpop.permute.xlu1 %681  ;;  %866 = vperm.xlu0 %3067, %v825_v0   ;;  %v826_v7 = vsel %vm714_vm1, 1, %v3446_v2 }
 0x183   : > { %863 = vperm.xlu1 %3068, %v824_v1   ;;  %vm699_vm2 = vcmp.ne.s32.totalorder %v682_v3, 0  ;;  %vm700_vm13 = vcmp.ne.s32.totalorder %v684_v60, 0  ;;  %v717_v1 = vld [vmem:[#allocation3] sm:$0xff]  ;;  %v718_v60 = vld [vmem:[#allocation3 + $0x8] sm:$0xff]  ;;  %v719_v3 = vld [vmem:[#allocation3 + $0x10] sm:$0xff] }
 0x184   : > { %vm715_vm15 = vmand %vm538_vm0, %vm699_vm2  ;;  %2282 = vmatpush2.bf16.msra.mxu1 %v3123_v29 }
 0x185   : > { %v827_v4 = vsel %vm715_vm15, 1, %v3446_v2  ;;  %vm716_vm4 = vmand %vm539_vm5, %vm700_vm13  ;;  %2283 = vmatprep.subr.bf16.mxu1 %v3127_v32 }
 0x186   : > { %872 = vperm.xlu0 %3067, %v827_v4   ;;  %v828_v5 = vsel %vm716_vm4, 1, %v3446_v2  ;;  %v3102_v2 = vld [vmem:[%s3625_s17 + $0x20] ss:$8 sps:$4 sm:$0xff]   ;;  %v720_v4 = vld [vmem:[#allocation3 + $0x18] sm:$0xff] }
 0x187   : > { %869 = vperm.xlu1 %3068, %v826_v7   ;;  %2235 = vmatpush1.bf16.msra.mxu0 %v3102_v2 }
 0x188   : > { %2236 = vmatprep.subr.bf16.mxu0 %v3106_v16  ;;  %2284 = vmatpush2.bf16.msra.mxu1 %v3129_v33 }
 0x189   : > { %2285 = vmatprep.subr.bf16.mxu1 %v3133_v36 }
 0x18a   : > { %3069 = vset.pattern.permute.xlu0 %v3451_v10 }
 0x18b   : > { %875 = vperm.xlu1 %3068, %v828_v5   ;;  %1334 = vperm.xlu0 %3069, %v3215_v8  }
 0x18c   : > { %2237 = vmatpush1.bf16.msra.mxu0 %v3108_v18  ;;  %2286 = vmatpush2.bf16.msra.mxu1 %v3135_v37 }
 0x18d   : > { %2238 = vmatprep.subr.bf16.mxu0 %v3112_v21  ;;  %2287 = vmatprep.subr.bf16.mxu1 %v3139_v14 }
 0x190   : > { %2239 = vmatpush1.bf16.msra.mxu0 %v3114_v23  ;;  %2288 = vmatpush2.bf16.msra.mxu1 %v3141_v40 }
 0x191   : > { %2240 = vmatprep.subr.bf16.mxu0 %v3118_v26  ;;  %2289 = vmatprep.subr.bf16.mxu1 %v3145_v43 }
 0x194   : > { %2241 = vmatpush2.bf16.msra.mxu0 %v3120_v27  ;;  %2290 = vmatpush2.bf16.msra.mxu1 %v3147_v44 }
 0x195   : > { %2242 = vmatprep.subr.bf16.mxu0 %v3124_v30  ;;  %2291 = vmatprep.subr.bf16.mxu1 %v3151_v46  ;;  %v729_v30 = vld [vmem:[#allocation3 + $0x60] sm:$0xff] }
 0x198   : > { %2243 = vmatpush2.bf16.msra.mxu0 %v3126_v31  ;;  %2292 = vmatpush2.bf16.msra.mxu1 %v3153_v48  ;;  %v730_v31 = vld [vmem:[#allocation3 + $0x68] sm:$0xff] }
 0x199   : > { %2244 = vmatprep.subr.bf16.mxu0 %v3130_v34  ;;  %2293 = vmatprep.subr.bf16.mxu1 %v3157_v50  ;;  %v734_v48 = vld [vmem:[#allocation3 + $0x88] sm:$0xff] }
 0x19c   : > { %2245 = vmatpush2.bf16.msra.mxu0 %v3132_v35  ;;  %2294 = vmatpush2.bf16.msra.mxu1 %v3159_v52 }
 0x19d   : > { %2246 = vmatprep.subr.bf16.mxu0 %v3136_v38  ;;  %2295 = vmatprep.subr.bf16.mxu1 %v3163_v54  ;;  %v731_v38 = vld [vmem:[#allocation3 + $0x70] sm:$0xff] }
 0x1a0   : > { %2247 = vmatpush2.bf16.msra.mxu0 %v3138_v39  ;;  %2296 = vmatpush2.bf16.msra.mxu1 %v3165_v56  ;;  %v732_v39 = vld [vmem:[#allocation3 + $0x78] sm:$0xff] }
 0x1a1   : > { %2248 = vmatprep.subr.bf16.mxu0 %v3142_v41 }
 0x1a4   : > { %2249 = vmatpush2.bf16.msra.mxu0 %v3144_v42 }
 0x1a5   : > { %2250 = vmatprep.subr.bf16.mxu0 %v3148_v45 }
 0x1a8   : > { %2251 = vmatpush2.bf16.msra.mxu0 %v3150_v47  ;;  %v733_v47 = vld [vmem:[#allocation3 + $0x80] sm:$0xff] }
 0x1a9   : > { %2252 = vmatprep.subr.bf16.mxu0 %v3154_v49  ;;  %v3168_v49 = vld [vmem:[%s3625_s17 + $0x274] ss:$8 sps:$4 sm:$0xff]  }
 0x1ac   : > { %2253 = vmatpush2.bf16.msra.mxu0 %v3156_v51 }
 0x1ad   : > { %2254 = vmatprep.subr.bf16.mxu0 %v3160_v53 }
 0x1b0   : > { %2255 = vmatpush2.bf16.msra.mxu0 %v3162_v55 }
 0x1b1   : > { %2306 = vmatprep.subr.bf16.mxu0 %v3168_v49 }
 0x1e5   : > { %v834_v0 = vpop.permute.xlu1 %833 }
 0x1e6   : > { %vm878_vm5 = vcmp.eq.s32.totalorder %v834_v0, 1  ;;  %v831_v7 = vpop.permute.xlu0 %830 }
 0x1e7   : > { %v899_v5 = vsel %vm878_vm5, %v723_v57, 0.0  ;;  %v900_v8 = vsel %vm878_vm5, %v724_v58, 0.0  ;;  %v901_v10 = vsel %vm878_vm5, %v725_v59, 0.0  ;;  %v902_v22 = vsel %vm878_vm5, %v726_v61, 0.0  ;;  %v735_v58 = vld [vmem:[#allocation3 + $0x90] sm:$0xff]  ;;  %v736_v59 = vld [vmem:[#allocation3 + $0x98] sm:$0xff] }
 0x1e8   : > { %v903_v6 = vsel %vm878_vm5, %v727_v62, 0.0  ;;  %v904_v2 = vsel %vm878_vm5, %v728_v63, 0.0  ;;  %vm877_vm6 = vcmp.eq.s32.totalorder %v831_v7, 1  ;;  %vm1642_vm5 = vcmask 1041409  }
 0x1e9   : > { %v893_v13 = vsel %vm877_vm6, %v717_v1, 0.0  ;;  %v894_v15 = vsel %vm877_vm6, %v718_v60, 0.0  ;;  %v895_v16 = vsel %vm877_vm6, %v719_v3, 0.0  ;;  %v896_v18 = vsel %vm877_vm6, %v720_v4, 0.0 }
 0x1ea   : > { %v897_v19 = vsel %vm877_vm6, %v721_v11, 0.0  ;;  %v898_v20 = vsel %vm877_vm6, %v722_v12, 0.0  ;;  %v989_v21 = vadd.f32 %v899_v5, %v893_v13  ;;  %v996_v23 = vadd.f32 %v900_v8, %v894_v15  ;;  %v837_v24 = vpop.permute.xlu1 %836  ;;  %v3882_v25 = vpop.permute.xlu0 %839  ;;  %v737_v5 = vld [vmem:[#allocation3 + $0xa0] sm:$0xff]  ;;  %v738_v8 = vld [vmem:[#allocation3 + $0xa8] sm:$0xff] }
 0x1eb   : > { %v1003_v26 = vadd.f32 %v901_v10, %v895_v16  ;;  %v1010_v27 = vadd.f32 %v902_v22, %v896_v18  ;;  %v1017_v28 = vadd.f32 %v903_v6, %v897_v19  ;;  %v1024_v29 = vadd.f32 %v904_v2, %v898_v20  ;;  %v739_v16 = vld [vmem:[#allocation3 + $0xb0] sm:$0xff]  ;;  %v740_v18 = vld [vmem:[#allocation3 + $0xb8] sm:$0xff] }
 0x1ec   : > { %v990_v32 = vrot.slane %v989_v21, 4  ;;  %v997_v33 = vrot.slane %v996_v23, 4  ;;  %vm879_vm7 = vcmp.eq.s32.totalorder %v837_v24, 1  ;;  %vm880_vm8 = vcmp.eq.s32.totalorder %v3882_v25, 1  ;;  %v743_v25 = vld [vmem:[#allocation3 + $0xd0] sm:$0xff] }
 0x1ed   : > { %v1004_v34 = vrot.slane %v1003_v26, 4  ;;  %v1011_v35 = vrot.slane %v1010_v27, 4  ;;  %v1018_v36 = vrot.slane %v1017_v28, 4  ;;  %v1025_v37 = vrot.slane %v1024_v29, 4 }
 0x1ee   : > { %v991_v14 = vadd.f32 %v990_v32, %v989_v21  ;;  %v998_v40 = vadd.f32 %v997_v33, %v996_v23  ;;  %v905_v41 = vsel %vm879_vm7, %v729_v30, 0.0  ;;  %v906_v42 = vsel %vm879_vm7, %v730_v31, 0.0  ;;  %v3890_v61 = vpop.permute.xlu1 %842 }
 0x1ef   : > { %v1005_v43 = vadd.f32 %v1004_v34, %v1003_v26  ;;  %v1012_v44 = vadd.f32 %v1011_v35, %v1010_v27  ;;  %v1019_v45 = vadd.f32 %v1018_v36, %v1017_v28  ;;  %v1026_v46 = vadd.f32 %v1025_v37, %v1024_v29 }
 0x1f0   : > { %v992_v50 = vrot.slane %v991_v14, 2  ;;  %v999_v51 = vrot.slane %v998_v40, 2  ;;  %v907_v52 = vsel %vm879_vm7, %v731_v38, 0.0  ;;  %v908_v53 = vsel %vm879_vm7, %v732_v39, 0.0  ;;  %v741_v38 = vld [vmem:[#allocation3 + $0xc0] sm:$0xff]  ;;  %v742_v39 = vld [vmem:[#allocation3 + $0xc8] sm:$0xff] }
 0x1f1   : > { %v1006_v54 = vrot.slane %v1005_v43, 2  ;;  %v1013_v55 = vrot.slane %v1012_v44, 2  ;;  %v1020_v56 = vrot.slane %v1019_v45, 2  ;;  %v1027_v57 = vrot.slane %v1026_v46, 2 }
 0x1f2   : > { %v993_v62 = vadd.f32 %v992_v50, %v991_v14  ;;  %v1000_v63 = vadd.f32 %v999_v51, %v998_v40  ;;  %v909_v0 = vsel %vm879_vm7, %v733_v47, 0.0  ;;  %v910_v1 = vsel %vm879_vm7, %v734_v48, 0.0  ;;  %v3914_v29 = vpop.permute.xlu1 %845  ;;  %v744_v47 = vld [vmem:[#allocation3 + $0xd8] sm:$0xff] }
 0x1f3   : > { %v1007_v60 = vadd.f32 %v1006_v54, %v1005_v43  ;;  %v1014_v3 = vadd.f32 %v1013_v55, %v1012_v44  ;;  %v1021_v4 = vadd.f32 %v1020_v56, %v1019_v45  ;;  %v1028_v7 = vadd.f32 %v1027_v57, %v1026_v46  ;;  %v745_v54 = vld [vmem:[#allocation3 + $0xe0] sm:$0xff]  ;;  %v746_v55 = vld [vmem:[#allocation3 + $0xe8] sm:$0xff] }
 0x1f4   : > { %v994_v10 = vrot.slane %v993_v62, 1  ;;  %v1001_v11 = vrot.slane %v1000_v63, 1  ;;  %v911_v12 = vsel %vm880_vm8, %v735_v58, 0.0  ;;  %v912_v22 = vsel %vm880_vm8, %v736_v59, 0.0 }
 0x1f5   : > { %v1008_v6 = vrot.slane %v1007_v60, 1  ;;  %v1015_v2 = vrot.slane %v1014_v3, 1  ;;  %v1022_v13 = vrot.slane %v1021_v4, 1  ;;  %v1029_v15 = vrot.slane %v1028_v7, 1 }
 0x1f6   : > { %v3898_v19 = vadd.f32 %v994_v10, %v993_v62  ;;  %v3900_v20 = vadd.f32 %v1001_v11, %v1000_v63  ;;  %v913_v21 = vsel %vm880_vm8, %v737_v5, 0.0  ;;  %v914_v23 = vsel %vm880_vm8, %v738_v8, 0.0 }
 0x1f7   : > { %v3906_v24 = vadd.f32 %v1008_v6, %v1007_v60  ;;  %v3908_v26 = vadd.f32 %v1015_v2, %v1014_v3  ;;  %v3910_v27 = vadd.f32 %v1022_v13, %v1021_v4  ;;  %v3912_v28 = vadd.f32 %v1029_v15, %v1028_v7  ;;  %v747_v60 = vld [vmem:[#allocation3 + $0xf0] sm:$0xff]  ;;  %v748_v3 = vld [vmem:[#allocation3 + $0xf8] sm:$0xff]  ;;  %v749_v6 = vld [vmem:[#allocation3 + $0x100] sm:$0xff] }
 0x1f8   : > { %v915_v30 = vsel %vm880_vm8, %v739_v16, 0.0  ;;  %v916_v31 = vsel %vm880_vm8, %v740_v18, 0.0  ;;  %v1031_v32 = vadd.f32 %v911_v12, %v905_v41  ;;  %v1038_v33 = vadd.f32 %v912_v22, %v906_v42  ;;  %v750_v2 = vld [vmem:[#allocation3 + $0x108] sm:$0xff] }
 0x1f9   : > { %4451 = vst [vmem:[#allocation17_spill] sm:$0xff] %v3910_v27  ;;  %v1045_v34 = vadd.f32 %v913_v21, %v907_v52  ;;  %v1052_v35 = vadd.f32 %v914_v23, %v908_v53  ;;  %v1059_v36 = vadd.f32 %v915_v30, %v909_v0  ;;  %v1066_v37 = vadd.f32 %v916_v31, %v910_v1 }
 0x1fa   : > { %v1032_v14 = vrot.slane %v1031_v32, 4  ;;  %v1039_v40 = vrot.slane %v1038_v33, 4  ;;  %vm881_vm9 = vcmp.eq.s32.totalorder %v3890_v61, 1  ;;  %vm882_vm3 = vcmp.eq.s32.totalorder %v3914_v29, 1  ;;  %v751_v61 = vld [vmem:[#allocation3 + $0x110] sm:$0xff]  ;;  %v768_v29 = vld [vmem:[#allocation3 + $0x198] sm:$0xff] }
 0x1fb   : > { %v1046_v43 = vrot.slane %v1045_v34, 4  ;;  %v1053_v44 = vrot.slane %v1052_v35, 4  ;;  %v1060_v45 = vrot.slane %v1059_v36, 4  ;;  %v1067_v46 = vrot.slane %v1066_v37, 4 }
 0x1fc   : > { %v1033_v41 = vadd.f32 %v1032_v14, %v1031_v32  ;;  %v1040_v42 = vadd.f32 %v1039_v40, %v1038_v33  ;;  %v917_v48 = vsel %vm881_vm9, %v741_v38, 0.0  ;;  %v918_v49 = vsel %vm881_vm9, %v742_v39, 0.0  ;;  %v752_v32 = vld [vmem:[#allocation3 + $0x118] sm:$0xff]  ;;  %v855_v40 = vpop.permute.xlu0 %854 }
 0x1fd   : > { %v1047_v50 = vadd.f32 %v1046_v43, %v1045_v34  ;;  %v1054_v51 = vadd.f32 %v1053_v44, %v1052_v35  ;;  %v1061_v52 = vadd.f32 %v1060_v45, %v1059_v36  ;;  %v1068_v53 = vadd.f32 %v1067_v46, %v1066_v37  ;;  %v3954_v43 = vpop.permute.xlu1 %857 }
 0x1fe   : > { %v1034_v56 = vrot.slane %v1033_v41, 2  ;;  %v1041_v57 = vrot.slane %v1040_v42, 2  ;;  %v919_v58 = vsel %vm881_vm9, %v743_v25, 0.0  ;;  %v920_v59 = vsel %vm881_vm9, %v744_v47, 0.0 }
 0x1ff   : > { %v1048_v62 = vrot.slane %v1047_v50, 2  ;;  %v1055_v63 = vrot.slane %v1054_v51, 2  ;;  %v1062_v0 = vrot.slane %v1061_v52, 2  ;;  %v1069_v1 = vrot.slane %v1068_v53, 2 }
 0x200   : > { %v1035_v4 = vadd.f32 %v1034_v56, %v1033_v41  ;;  %v1042_v7 = vadd.f32 %v1041_v57, %v1040_v42  ;;  %v921_v5 = vsel %vm881_vm9, %v745_v54, 0.0  ;;  %v922_v8 = vsel %vm881_vm9, %v746_v55, 0.0 }
 0x201   : > { %v1049_v10 = vadd.f32 %v1048_v62, %v1047_v50  ;;  %v1056_v11 = vadd.f32 %v1055_v63, %v1054_v51  ;;  %v1063_v12 = vadd.f32 %v1062_v0, %v1061_v52  ;;  %v1070_v22 = vadd.f32 %v1069_v1, %v1068_v53  ;;  %v765_v51 = vld [vmem:[#allocation3 + $0x180] sm:$0xff]  ;;  %v766_v52 = vld [vmem:[#allocation3 + $0x188] sm:$0xff]  ;;  %v767_v63 = vld [vmem:[#allocation3 + $0x190] sm:$0xff] }
 0x202   : > { %v1036_v13 = vrot.slane %v1035_v4, 1  ;;  %v1043_v15 = vrot.slane %v1042_v7, 1  ;;  %v923_v16 = vsel %vm882_vm3, %v747_v60, 0.0  ;;  %v924_v18 = vsel %vm882_vm3, %v748_v3, 0.0 }
 0x203   : > { %v1050_v21 = vrot.slane %v1049_v10, 1  ;;  %v1057_v23 = vrot.slane %v1056_v11, 1  ;;  %v1064_v30 = vrot.slane %v1063_v12, 1  ;;  %v1071_v31 = vrot.slane %v1070_v22, 1 }
 0x204   : > { %v3938_v33 = vadd.f32 %v1036_v13, %v1035_v4  ;;  %v3940_v34 = vadd.f32 %v1043_v15, %v1042_v7  ;;  %v925_v35 = vsel %vm882_vm3, %v749_v6, 0.0  ;;  %v926_v36 = vsel %vm882_vm3, %v750_v2, 0.0  ;;  %v769_v4 = vld [vmem:[#allocation3 + $0x1a0] sm:$0xff]  ;;  %v770_v7 = vld [vmem:[#allocation3 + $0x1a8] sm:$0xff]  ;;  %v771_v13 = vld [vmem:[#allocation3 + $0x1b0] sm:$0xff] }
 0x205   : > { %v3946_v37 = vadd.f32 %v1050_v21, %v1049_v10  ;;  %v3948_v38 = vadd.f32 %v1057_v23, %v1056_v11  ;;  %v3950_v39 = vadd.f32 %v1064_v30, %v1063_v12  ;;  %v3952_v14 = vadd.f32 %v1071_v31, %v1070_v22  ;;  %v772_v15 = vld [vmem:[#allocation3 + $0x1b8] sm:$0xff] }
 0x206   : > { %v927_v44 = vsel %vm882_vm3, %v751_v61, 0.0  ;;  %v928_v45 = vsel %vm882_vm3, %v752_v32, 0.0  ;;  %v1073_v46 = vadd.f32 %v923_v16, %v917_v48  ;;  %v1080_v25 = vadd.f32 %v924_v18, %v918_v49 }
 0x207   : > { %4452 = vst [vmem:[#allocation18_spill] sm:$0xff] %v3950_v39  ;;  %v1087_v47 = vadd.f32 %v925_v35, %v919_v58  ;;  %v1094_v41 = vadd.f32 %v926_v36, %v920_v59  ;;  %v1101_v42 = vadd.f32 %v927_v44, %v921_v5  ;;  %v1108_v50 = vadd.f32 %v928_v45, %v922_v8  ;;  %v773_v35 = vld [vmem:[#allocation3 + $0x1c0] sm:$0xff]  ;;  %v774_v36 = vld [vmem:[#allocation3 + $0x1c8] sm:$0xff] }
 0x208   : > { %v1074_v53 = vrot.slane %v1073_v46, 4  ;;  %v1081_v54 = vrot.slane %v1080_v25, 4  ;;  %vm885_vm10 = vcmp.eq.s32.totalorder %v855_v40, 1  ;;  %vm886_vm11 = vcmp.eq.s32.totalorder %v3954_v43, 1  ;;  %v775_v40 = vld [vmem:[#allocation3 + $0x1d0] sm:$0xff]  ;;  %v756_v43 = vld [vmem:[#allocation3 + $0x138] sm:$0xff] }
 0x209   : > { %v1088_v55 = vrot.slane %v1087_v47, 4  ;;  %v1095_v56 = vrot.slane %v1094_v41, 4  ;;  %v1102_v57 = vrot.slane %v1101_v42, 4  ;;  %v1109_v62 = vrot.slane %v1108_v50, 4 }
 0x20a   : > { %v1075_v0 = vadd.f32 %v1074_v53, %v1073_v46  ;;  %v1082_v48 = vadd.f32 %v1081_v54, %v1080_v25  ;;  %v941_v49 = vsel %vm885_vm10, %v765_v51, 0.0  ;;  %v942_v58 = vsel %vm885_vm10, %v766_v52, 0.0  ;;  %v776_v51 = vld [vmem:[#allocation3 + $0x1d8] sm:$0xff] }
 0x20b   : > { %v1089_v59 = vadd.f32 %v1088_v55, %v1087_v47  ;;  %v1096_v1 = vadd.f32 %v1095_v56, %v1094_v41  ;;  %v1103_v60 = vadd.f32 %v1102_v57, %v1101_v42  ;;  %v1110_v3 = vadd.f32 %v1109_v62, %v1108_v50 }
 0x20c   : > { %v1076_v5 = vrot.slane %v1075_v0, 2  ;;  %v1083_v8 = vrot.slane %v1082_v48, 2  ;;  %v943_v10 = vsel %vm885_vm10, %v767_v63, 0.0  ;;  %v944_v11 = vsel %vm885_vm10, %v768_v29, 0.0  ;;  %v849_v29 = vpop.permute.xlu0 %848 }
 0x20d   : > { %v1090_v12 = vrot.slane %v1089_v59, 2  ;;  %v1097_v22 = vrot.slane %v1096_v1, 2  ;;  %v1104_v6 = vrot.slane %v1103_v60, 2  ;;  %v1111_v2 = vrot.slane %v1110_v3, 2 }
 0x20e   : > { %v1077_v16 = vadd.f32 %v1076_v5, %v1075_v0  ;;  %v1084_v18 = vadd.f32 %v1083_v8, %v1082_v48  ;;  %v945_v21 = vsel %vm885_vm10, %v769_v4, 0.0  ;;  %v946_v23 = vsel %vm885_vm10, %v770_v7, 0.0  ;;  %v3987_v0 = vpop.permute.xlu1 %851  ;;  %v753_v8 = vld [vmem:[#allocation3 + $0x120] sm:$0xff] }
 0x20f   : > { %v1091_v30 = vadd.f32 %v1090_v12, %v1089_v59  ;;  %v1098_v31 = vadd.f32 %v1097_v22, %v1096_v1  ;;  %v1105_v61 = vadd.f32 %v1104_v6, %v1103_v60  ;;  %v1112_v32 = vadd.f32 %v1111_v2, %v1110_v3  ;;  %v754_v12 = vld [vmem:[#allocation3 + $0x128] sm:$0xff] }
 0x210   : > { %v1078_v44 = vrot.slane %v1077_v16, 1  ;;  %v1085_v45 = vrot.slane %v1084_v18, 1  ;;  %v947_v46 = vsel %vm886_vm11, %v771_v13, 0.0  ;;  %v948_v25 = vsel %vm886_vm11, %v772_v15, 0.0 }
 0x211   : > { %v1092_v47 = vrot.slane %v1091_v30, 1  ;;  %v1099_v41 = vrot.slane %v1098_v31, 1  ;;  %v1106_v42 = vrot.slane %v1105_v61, 1  ;;  %v1113_v50 = vrot.slane %v1112_v32, 1 }
 0x212   : > { %v3971_v52 = vadd.f32 %v1078_v44, %v1077_v16  ;;  %v3973_v53 = vadd.f32 %v1085_v45, %v1084_v18  ;;  %v949_v54 = vsel %vm886_vm11, %v773_v35, 0.0  ;;  %v950_v55 = vsel %vm886_vm11, %v774_v36, 0.0  ;;  %v755_v18 = vld [vmem:[#allocation3 + $0x130] sm:$0xff] }
 0x213   : > { %v3979_v56 = vadd.f32 %v1092_v47, %v1091_v30  ;;  %v3981_v57 = vadd.f32 %v1099_v41, %v1098_v31  ;;  %v3983_v62 = vadd.f32 %v1106_v42, %v1105_v61  ;;  %v3985_v63 = vadd.f32 %v1113_v50, %v1112_v32  ;;  %v757_v61 = vld [vmem:[#allocation3 + $0x140] sm:$0xff]  ;;  %v758_v32 = vld [vmem:[#allocation3 + $0x148] sm:$0xff]  ;;  %v759_v42 = vld [vmem:[#allocation3 + $0x150] sm:$0xff] }
 0x214   : > { %v951_v48 = vsel %vm886_vm11, %v775_v40, 0.0  ;;  %v952_v59 = vsel %vm886_vm11, %v776_v51, 0.0  ;;  %v1157_v1 = vadd.f32 %v947_v46, %v941_v49  ;;  %v1164_v60 = vadd.f32 %v948_v25, %v942_v58  ;;  %v760_v50 = vld [vmem:[#allocation3 + $0x158] sm:$0xff] }
 0x215   : > { %4453 = vst [vmem:[#allocation19_spill] sm:$0xff] %v3983_v62  ;;  %v1171_v3 = vadd.f32 %v949_v54, %v943_v10  ;;  %v1178_v4 = vadd.f32 %v950_v55, %v944_v11  ;;  %v1185_v7 = vadd.f32 %v951_v48, %v945_v21  ;;  %v1192_v5 = vadd.f32 %v952_v59, %v946_v23 }
 0x216   : > { %v1158_v22 = vrot.slane %v1157_v1, 4  ;;  %v1165_v6 = vrot.slane %v1164_v60, 4  ;;  %vm883_vm14 = vcmp.eq.s32.totalorder %v849_v29, 1  ;;  %vm884_vm12 = vcmp.eq.s32.totalorder %v3987_v0, 1 }
 0x217   : > { %v1172_v2 = vrot.slane %v1171_v3, 4  ;;  %v1179_v13 = vrot.slane %v1178_v4, 4  ;;  %v1186_v15 = vrot.slane %v1185_v7, 4  ;;  %v1193_v16 = vrot.slane %v1192_v5, 4 }
 0x218   : > { %v1159_v30 = vadd.f32 %v1158_v22, %v1157_v1  ;;  %v1166_v49 = vadd.f32 %v1165_v6, %v1164_v60  ;;  %v929_v58 = vsel %vm883_vm14, %v753_v8, 0.0  ;;  %v930_v10 = vsel %vm883_vm14, %v754_v12, 0.0  ;;  %v764_v12 = vld [vmem:[#allocation3 + $0x178] sm:$0xff] }
 0x219   : > { %v1173_v11 = vadd.f32 %v1172_v2, %v1171_v3  ;;  %v1180_v21 = vadd.f32 %v1179_v13, %v1178_v4  ;;  %v1187_v23 = vadd.f32 %v1186_v15, %v1185_v7  ;;  %v1194_v31 = vadd.f32 %v1193_v16, %v1192_v5  ;;  %v761_v3 = vld [vmem:[#allocation3 + $0x160] sm:$0xff]  ;;  %v762_v4 = vld [vmem:[#allocation3 + $0x168] sm:$0xff]  ;;  %v763_v7 = vld [vmem:[#allocation3 + $0x170] sm:$0xff] }
 0x21a   : > { %v1160_v35 = vrot.slane %v1159_v30, 2  ;;  %v1167_v36 = vrot.slane %v1166_v49, 2  ;;  %v931_v44 = vsel %vm883_vm14, %v755_v18, 0.0  ;;  %v932_v45 = vsel %vm883_vm14, %v756_v43, 0.0 }
 0x21b   : > { %v1174_v46 = vrot.slane %v1173_v11, 2  ;;  %v1181_v25 = vrot.slane %v1180_v21, 2  ;;  %v1188_v47 = vrot.slane %v1187_v23, 2  ;;  %v1195_v41 = vrot.slane %v1194_v31, 2 }
 0x21c   : > { %v1161_v40 = vadd.f32 %v1160_v35, %v1159_v30  ;;  %v3998_v51 = vadd.f32 %v1167_v36, %v1166_v49  ;;  %v933_v54 = vsel %vm883_vm14, %v757_v61, 0.0  ;;  %v934_v55 = vsel %vm883_vm14, %v758_v32, 0.0  ;;  %v861_v49 = vpop.permute.xlu0 %860 }
 0x21d   : > { %v1175_v48 = vadd.f32 %v1174_v46, %v1173_v11  ;;  %v4002_v59 = vadd.f32 %v1181_v25, %v1180_v21  ;;  %v1189_v1 = vadd.f32 %v1188_v47, %v1187_v23  ;;  %v1196_v60 = vadd.f32 %v1195_v41, %v1194_v31  ;;  %v4018_v11 = vpop.permute.xlu1 %863  ;;  %v777_v25 = vld [vmem:[#allocation3 + $0x1e0] sm:$0xff]  ;;  %v778_v47 = vld [vmem:[#allocation3 + $0x1e8] sm:$0xff] }
 0x21e   : > { %v1162_v5 = vrot.slane %v1161_v40, 1  ;;  %v935_v22 = vsel %vm884_vm12, %v759_v42, 0.0  ;;  %v936_v6 = vsel %vm884_vm12, %v760_v50, 0.0  ;;  %v937_v18 = vsel %vm884_vm12, %v761_v3, 0.0  ;;  %v780_v3 = vld [vmem:[#allocation3 + $0x1f8] sm:$0xff] }
 0x21f   : > { %v1176_v29 = vrot.slane %v1175_v48, 1  ;;  %v1190_v13 = vrot.slane %v1189_v1, 1  ;;  %v1197_v15 = vrot.slane %v1196_v60, 1  ;;  %v938_v43 = vsel %vm884_vm12, %v762_v4, 0.0 }
 0x220   : > { %v4010_v16 = vadd.f32 %v1162_v5, %v1161_v40  ;;  %v939_v30 = vsel %vm884_vm12, %v763_v7, 0.0  ;;  %v940_v61 = vsel %vm884_vm12, %v764_v12, 0.0  ;;  %v1115_v32 = vadd.f32 %v935_v22, %v929_v58  ;;  %v782_v5 = vld [vmem:[#allocation3 + $0x208] sm:$0xff] }
 0x221   : > { %v4020_v21 = vadd.f32 %v1176_v29, %v1175_v48  ;;  %v4022_v23 = vadd.f32 %v1190_v13, %v1189_v1  ;;  %v4024_v31 = vadd.f32 %v1197_v15, %v1196_v60  ;;  %v1122_v35 = vadd.f32 %v936_v6, %v930_v10  ;;  %v779_v60 = vld [vmem:[#allocation3 + $0x1f0] sm:$0xff] }
 0x222   : > { %v1129_v36 = vadd.f32 %v937_v18, %v931_v44  ;;  %v1136_v46 = vadd.f32 %v938_v43, %v932_v45  ;;  %v1143_v41 = vadd.f32 %v939_v30, %v933_v54  ;;  %v1150_v42 = vadd.f32 %v940_v61, %v934_v55  ;;  %v781_v55 = vld [vmem:[#allocation3 + $0x200] sm:$0xff]  ;;  %v783_v30 = vld [vmem:[#allocation3 + $0x210] sm:$0xff]  ;;  %v784_v61 = vld [vmem:[#allocation3 + $0x218] sm:$0xff] }
 0x223   : > { %4454 = vst [vmem:[#allocation20_spill] sm:$0xff] %v4022_v23  ;;  %4455 = vst [vmem:[#allocation21_spill] sm:$0xff] %v4024_v31  ;;  %vm887_vm1 = vcmp.eq.s32.totalorder %v861_v49, 1  ;;  %vm888_vm0 = vcmp.eq.s32.totalorder %v4018_v11, 1  ;;  %v1116_v50 = vrot.slane %v1115_v32, 4  ;;  %v1123_v40 = vrot.slane %v1122_v35, 4 }
 0x224   : > { %v1130_v48 = vrot.slane %v1129_v36, 4  ;;  %v1137_v1 = vrot.slane %v1136_v46, 4  ;;  %v1144_v4 = vrot.slane %v1143_v41, 4  ;;  %v1151_v0 = vrot.slane %v1150_v42, 4  ;;  %v787_v49 = vld [vmem:[#allocation3 + $0x230] sm:$0xff] }
 0x225   : > { %v953_v58 = vsel %vm887_vm1, %v777_v25, 0.0  ;;  %v954_v10 = vsel %vm887_vm1, %v778_v47, 0.0  ;;  %v1117_v44 = vadd.f32 %v1116_v50, %v1115_v32  ;;  %v1124_v45 = vadd.f32 %v1123_v40, %v1122_v35  ;;  %v785_v50 = vld [vmem:[#allocation3 + $0x220] sm:$0xff]  ;;  %v786_v40 = vld [vmem:[#allocation3 + $0x228] sm:$0xff]  ;;  %v795_v23 = vld [vmem:[#allocation3 + $0x270] sm:$0xff] }
 0x226   : > { %v1131_v7 = vadd.f32 %v1130_v48, %v1129_v36  ;;  %v1138_v54 = vadd.f32 %v1137_v1, %v1136_v46  ;;  %v1145_v12 = vadd.f32 %v1144_v4, %v1143_v41  ;;  %v1152_v22 = vadd.f32 %v1151_v0, %v1150_v42 }
 0x227   : > { %v955_v6 = vsel %vm887_vm1, %v779_v60, 0.0  ;;  %v956_v29 = vsel %vm887_vm1, %v780_v3, 0.0  ;;  %v1118_v13 = vrot.slane %v1117_v44, 2  ;;  %v1125_v15 = vrot.slane %v1124_v45, 2 }
 0x228   : > { %v1132_v18 = vrot.slane %v1131_v7, 2  ;;  %v1139_v43 = vrot.slane %v1138_v54, 2  ;;  %v1146_v25 = vrot.slane %v1145_v12, 2  ;;  %v1153_v47 = vrot.slane %v1152_v22, 2 }
 0x229   : > { %v957_v32 = vsel %vm887_vm1, %v781_v55, 0.0  ;;  %v958_v35 = vsel %vm887_vm1, %v782_v5, 0.0  ;;  %v1119_v36 = vadd.f32 %v1118_v13, %v1117_v44  ;;  %v1126_v46 = vadd.f32 %v1125_v15, %v1124_v45  ;;  %v788_v5 = vld [vmem:[#allocation3 + $0x238] sm:$0xff] }
 0x22a   : > { %v1133_v41 = vadd.f32 %v1132_v18, %v1131_v7  ;;  %v1140_v42 = vadd.f32 %v1139_v43, %v1138_v54  ;;  %v1147_v48 = vadd.f32 %v1146_v25, %v1145_v12  ;;  %v1154_v1 = vadd.f32 %v1153_v47, %v1152_v22  ;;  %v867_v18 = vpop.permute.xlu0 %866  ;;  %v4051_v43 = vpop.permute.xlu1 %869 }
 0x22b   : > { %v959_v60 = vsel %vm888_vm0, %v783_v30, 0.0  ;;  %v960_v3 = vsel %vm888_vm0, %v784_v61, 0.0  ;;  %v1120_v4 = vrot.slane %v1119_v36, 1  ;;  %v1127_v0 = vrot.slane %v1126_v46, 1 }
 0x22c   : > { %v1134_v2 = vrot.slane %v1133_v41, 1  ;;  %v1141_v55 = vrot.slane %v1140_v42, 1  ;;  %v1148_v44 = vrot.slane %v1147_v48, 1  ;;  %v1155_v45 = vrot.slane %v1154_v1, 1 }
 0x22d   : > { %v961_v7 = vsel %vm888_vm0, %v785_v50, 0.0  ;;  %v962_v54 = vsel %vm888_vm0, %v786_v40, 0.0  ;;  %v4043_v12 = vadd.f32 %v1120_v4, %v1119_v36  ;;  %v4045_v22 = vadd.f32 %v1127_v0, %v1126_v46 }
 0x22e   : > { %v4047_v13 = vadd.f32 %v1134_v2, %v1133_v41  ;;  %v4049_v15 = vadd.f32 %v1141_v55, %v1140_v42  ;;  %v4053_v30 = vadd.f32 %v1148_v44, %v1147_v48  ;;  %v4055_v61 = vadd.f32 %v1155_v45, %v1154_v1  ;;  %v789_v41 = vld [vmem:[#allocation3 + $0x240] sm:$0xff]  ;;  %v790_v42 = vld [vmem:[#allocation3 + $0x248] sm:$0xff]  ;;  %v791_v44 = vld [vmem:[#allocation3 + $0x250] sm:$0xff] }
 0x22f   : > { %v963_v25 = vsel %vm888_vm0, %v787_v49, 0.0  ;;  %v964_v47 = vsel %vm888_vm0, %v788_v5, 0.0  ;;  %v1199_v36 = vadd.f32 %v959_v60, %v953_v58  ;;  %v1206_v46 = vadd.f32 %v960_v3, %v954_v10  ;;  %v792_v49 = vld [vmem:[#allocation3 + $0x258] sm:$0xff]  ;;  %v794_v3 = vld [vmem:[#allocation3 + $0x268] sm:$0xff] }
 0x230   : > { %4456 = vst [vmem:[#allocation22_spill] sm:$0xff] %v4053_v30  ;;  %v1213_v50 = vadd.f32 %v961_v7, %v955_v6  ;;  %v1220_v2 = vadd.f32 %v962_v54, %v956_v29  ;;  %v1227_v40 = vadd.f32 %v963_v25, %v957_v32  ;;  %v1234_v4 = vadd.f32 %v964_v47, %v958_v35  ;;  %v793_v35 = vld [vmem:[#allocation3 + $0x260] sm:$0xff] }
 0x231   : > { %vm889_vm2 = vcmp.eq.s32.totalorder %v867_v18, 1  ;;  %vm890_vm13 = vcmp.eq.s32.totalorder %v4051_v43, 1  ;;  %v1200_v48 = vrot.slane %v1199_v36, 4  ;;  %v1207_v1 = vrot.slane %v1206_v46, 4  ;;  %v801_v43 = vld [vmem:[#allocation3 + $0x2a0] sm:$0xff] }
 0x232   : > { %v1214_v0 = vrot.slane %v1213_v50, 4  ;;  %v1221_v55 = vrot.slane %v1220_v2, 4  ;;  %v1228_v45 = vrot.slane %v1227_v40, 4  ;;  %v1235_v11 = vrot.slane %v1234_v4, 4 }
 0x233   : > { %v965_v58 = vsel %vm889_vm2, %v789_v41, 0.0  ;;  %v966_v10 = vsel %vm889_vm2, %v790_v42, 0.0  ;;  %v1201_v6 = vadd.f32 %v1200_v48, %v1199_v36  ;;  %v1208_v29 = vadd.f32 %v1207_v1, %v1206_v46  ;;  %v796_v41 = vld [vmem:[#allocation3 + $0x278] sm:$0xff] }
 0x234   : > { %v1215_v60 = vadd.f32 %v1214_v0, %v1213_v50  ;;  %v1222_v32 = vadd.f32 %v1221_v55, %v1220_v2  ;;  %v1229_v5 = vadd.f32 %v1228_v45, %v1227_v40  ;;  %v1236_v7 = vadd.f32 %v1235_v11, %v1234_v4  ;;  %v797_v50 = vld [vmem:[#allocation3 + $0x280] sm:$0xff]  ;;  %v798_v2 = vld [vmem:[#allocation3 + $0x288] sm:$0xff]  ;;  %v799_v0 = vld [vmem:[#allocation3 + $0x290] sm:$0xff] }
 0x235   : > { %v967_v54 = vsel %vm889_vm2, %v791_v44, 0.0  ;;  %v968_v25 = vsel %vm889_vm2, %v792_v49, 0.0  ;;  %v1202_v47 = vrot.slane %v1201_v6, 2  ;;  %v1209_v8 = vrot.slane %v1208_v29, 2  ;;  %v800_v55 = vld [vmem:[#allocation3 + $0x298] sm:$0xff] }
 0x236   : > { %v1216_v17 = vrot.slane %v1215_v60, 2  ;;  %v1223_v9 = vrot.slane %v1222_v32, 2  ;;  %v1230_v30 = vrot.slane %v1229_v5, 2  ;;  %v1237_v42 = vrot.slane %v1236_v7, 2 }
 0x237   : > { %v969_v36 = vsel %vm889_vm2, %v793_v35, 0.0  ;;  %v970_v46 = vsel %vm889_vm2, %v794_v3, 0.0  ;;  %v1203_v40 = vadd.f32 %v1202_v47, %v1201_v6  ;;  %v4068_v4 = vadd.f32 %v1209_v8, %v1208_v29 }
 0x238   : > { %v1217_v48 = vadd.f32 %v1216_v17, %v1215_v60  ;;  %v4070_v1 = vadd.f32 %v1223_v9, %v1222_v32  ;;  %v1231_v44 = vadd.f32 %v1230_v30, %v1229_v5  ;;  %v1238_v49 = vadd.f32 %v1237_v42, %v1236_v7  ;;  %v873_v5 = vpop.permute.xlu0 %872  ;;  %v876_v7 = vpop.permute.xlu1 %875 }
 0x239   : > { %v971_v45 = vsel %vm890_vm13, %v795_v23, 0.0  ;;  %v972_v11 = vsel %vm890_vm13, %v796_v41, 0.0  ;;  %v1204_v18 = vrot.slane %v1203_v40, 1  ;;  %v973_v6 = vsel %vm890_vm13, %v797_v50, 0.0 }
 0x23a   : > { %v1218_v35 = vrot.slane %v1217_v48, 1  ;;  %v974_v17 = vsel %vm890_vm13, %v798_v2, 0.0  ;;  %v1232_v9 = vrot.slane %v1231_v44, 1  ;;  %v1239_v8 = vrot.slane %v1238_v49, 1 }
 0x23b   : > { %v975_v30 = vsel %vm890_vm13, %v799_v0, 0.0  ;;  %v976_v29 = vsel %vm890_vm13, %v800_v55, 0.0  ;;  %v4084_v23 = vadd.f32 %v1204_v18, %v1203_v40  ;;  %v1241_v32 = vadd.f32 %v971_v45, %v965_v58  ;;  %v802_v55 = vld [vmem:[#allocation3 + $0x2a8] sm:$0xff] }
 0x23c   : > { %v4086_v60 = vadd.f32 %v1218_v35, %v1217_v48  ;;  %v1248_v3 = vadd.f32 %v972_v11, %v966_v10  ;;  %v4088_v47 = vadd.f32 %v1232_v9, %v1231_v44  ;;  %v4090_v41 = vadd.f32 %v1239_v8, %v1238_v49  ;;  %v803_v48 = vld [vmem:[#allocation3 + $0x2b0] sm:$0xff]  ;;  %v804_v49 = vld [vmem:[#allocation3 + $0x2b8] sm:$0xff]  ;;  %v805_v11 = vld [vmem:[#allocation3 + $0x2c0] sm:$0xff] }
 0x23d   : > { %v1255_v42 = vadd.f32 %v973_v6, %v967_v54  ;;  %v1262_v50 = vadd.f32 %v974_v17, %v968_v25  ;;  %v1242_v2 = vrot.slane %v1241_v32, 4  ;;  %v1269_v0 = vadd.f32 %v975_v30, %v969_v36  ;;  %v806_v54 = vld [vmem:[#allocation3 + $0x2c8] sm:$0xff]  ;;  %v807_v6 = vld [vmem:[#allocation3 + $0x2d0] sm:$0xff] }
 0x23e   : > { %4457 = vst [vmem:[#allocation23_spill] sm:$0xff] %v4088_v47  ;;  %4458 = vst [vmem:[#allocation24_spill] sm:$0xff] %v4090_v41  ;;  %v1249_v62 = vrot.slane %v1248_v3, 4  ;;  %v1276_v39 = vadd.f32 %v976_v29, %v970_v46  ;;  %vm891_vm15 = vcmp.eq.s32.totalorder %v873_v5, 1  ;;  %vm892_vm4 = vcmp.eq.s32.totalorder %v876_v7, 1  ;;  %v809_v29 = vld [vmem:[#allocation3 + $0x2e0] sm:$0xff] }
 0x23f   : > { %v1256_v40 = vrot.slane %v1255_v42, 4  ;;  %v1263_v18 = vrot.slane %v1262_v50, 4  ;;  %v1243_v58 = vadd.f32 %v1242_v2, %v1241_v32  ;;  %v1270_v44 = vrot.slane %v1269_v0, 4  ;;  %v810_v32 = vld [vmem:[#allocation3 + $0x2e8] sm:$0xff] }
 0x240   : > { %v4092_v10 = vadd.f32 %v1249_v62, %v1248_v3  ;;  %v1277_v45 = vrot.slane %v1276_v39, 4  ;;  %v977_v36 = vsel %vm891_vm15, %v801_v43, 0.0  ;;  %v978_v46 = vsel %vm891_vm15, %v802_v55, 0.0  ;;  %v808_v62 = vld [vmem:[#allocation3 + $0x2d8] sm:$0xff] }
 0x241   : > { %v1257_v25 = vadd.f32 %v1256_v40, %v1255_v42  ;;  %v4094_v35 = vadd.f32 %v1263_v18, %v1262_v50  ;;  %v1244_v17 = vrot.slane %v1243_v58, 2  ;;  %v1271_v9 = vadd.f32 %v1270_v44, %v1269_v0  ;;  %v811_v40 = vld [vmem:[#allocation3 + $0x2f0] sm:$0xff]  ;;  %v812_v43 = vld [vmem:[#allocation3 + $0x2f8] sm:$0xff] }
 0x242   : > { %v1278_v8 = vadd.f32 %v1277_v45, %v1276_v39  ;;  %v979_v30 = vsel %vm891_vm15, %v803_v48, 0.0  ;;  %v980_v2 = vsel %vm891_vm15, %v804_v49, 0.0  ;;  %v981_v42 = vsel %vm891_vm15, %v805_v11, 0.0 }
 0x243   : > { %v1258_v3 = vrot.slane %v1257_v25, 2  ;;  %v982_v50 = vsel %vm891_vm15, %v806_v54, 0.0  ;;  %v4102_v18 = vadd.f32 %v1244_v17, %v1243_v58  ;;  %v1272_v55 = vrot.slane %v1271_v9, 2 }
 0x244   : > { %v1279_v47 = vrot.slane %v1278_v8, 2  ;;  %v983_v39 = vsel %vm892_vm4, %v807_v6, 0.0  ;;  %v984_v48 = vsel %vm892_vm4, %v808_v62, 0.0  ;;  %v985_v44 = vsel %vm892_vm4, %v809_v29, 0.0 }
 0x245   : > { %v4105_v0 = vadd.f32 %v1258_v3, %v1257_v25  ;;  %v986_v45 = vsel %vm892_vm4, %v810_v32, 0.0  ;;  %v1273_v49 = vadd.f32 %v1272_v55, %v1271_v9  ;;  %v987_v5 = vsel %vm892_vm4, %v811_v40, 0.0 }
 0x246   : > { %v4110_v11 = vadd.f32 %v1279_v47, %v1278_v8  ;;  %v988_v58 = vsel %vm892_vm4, %v812_v43, 0.0  ;;  %v1283_v54 = vadd.f32 %v983_v39, %v977_v36  ;;  %v1290_v17 = vadd.f32 %v984_v48, %v978_v46  ;;  %v4119_v43 = vpop.permute.xlu0 %1334 }
 0x247   : > { %v1297_v27 = vadd.f32 %v985_v44, %v979_v30  ;;  %v1304_v41 = vadd.f32 %v986_v45, %v980_v2  ;;  %v1274_v6 = vrot.slane %v1273_v49, 1  ;;  %v1311_v25 = vadd.f32 %v987_v5, %v981_v42 }
 0x248   : > { %v1318_v3 = vadd.f32 %v988_v58, %v982_v50  ;;  %v4459_v62 = vrot.slane %v3998_v51, 1  ;;  %v1284_v31 = vrot.slane %v1283_v54, 4  ;;  %v1291_v32 = vrot.slane %v1290_v17, 4 }
 0x249   : > { %v1298_v9 = vrot.slane %v1297_v27, 4  ;;  %v1305_v47 = vrot.slane %v1304_v41, 4  ;;  %v4117_v8 = vadd.f32 %v1274_v6, %v1273_v49  ;;  %v1312_v40 = vrot.slane %v1311_v25, 4 }
 0x24a   : > { %v1170_v29 = vadd.f32 %v4459_v62, %v3998_v51  ;;  %v1319_v7 = vrot.slane %v1318_v3, 4  ;;  %v1211_v36 = vrot.slane %v4068_v4, 1  ;;  %v1285_v46 = vadd.f32 %v1284_v31, %v1283_v54 }
 0x24b   : > { %4460 = vst [vmem:[#allocation25_spill] sm:$0xff] %v4117_v8  ;;  %v1292_v30 = vadd.f32 %v1291_v32, %v1290_v17  ;;  %v1299_v2 = vadd.f32 %v1298_v9, %v1297_v27  ;;  %v4122_v42 = vadd.f32 %v1305_v47, %v1304_v41  ;;  %v1313_v50 = vadd.f32 %v1312_v40, %v1311_v25 }
 0x24c   : > { %v1320_v55 = vadd.f32 %v1319_v7, %v1318_v3  ;;  %v1212_v51 = vadd.f32 %v1211_v36, %v4068_v4  ;;  %v1251_v39 = vrot.slane %v4092_v10, 2  ;;  %v1286_v48 = vrot.slane %v1285_v46, 2 }
 0x24d   : > { %v1300_v44 = vrot.slane %v1299_v2, 2  ;;  %v1293_v45 = vrot.slane %v1292_v30, 2  ;;  %v4127_v49 = vrot.slane %v4119_v43, 1  ;;  %v1314_v5 = vrot.slane %v1313_v50, 2 }
 0x24e   : > { %v1321_v58 = vrot.slane %v1320_v55, 2  ;;  %v1252_v31 = vadd.f32 %v1251_v39, %v4092_v10  ;;  %v4131_v27 = vrot.slane %v4119_v43, 2  ;;  %v4133_v41 = vadd.f32 %v1286_v48, %v1285_v46 }
 0x24f   : > { %v4135_v54 = vadd.f32 %v1300_v44, %v1299_v2  ;;  %v1294_v4 = vadd.f32 %v1293_v45, %v1292_v30  ;;  %v4138_v17 = vrot.slane %v4119_v43, 3  ;;  %v4140_v6 = vadd.f32 %v1314_v5, %v1313_v50 }
 0x250   : > { %v4142_v25 = vadd.f32 %v1321_v58, %v1320_v55  ;;  %v1253_v3 = vrot.slane %v1252_v31, 1  ;;  %v4145_v62 = vrot.slane %v4119_v43, 4  ;;  %vm1645_vm6 = vcmask 1042434  }
 0x251   : > { %v1295_v10 = vrot.slane %v1294_v4, 1  ;;  %v4148_v32 = vrot.slane %v4119_v43, 5  ;;  %v4151_v9 = vrot.slane %v4119_v43, 6  ;;  %v4154_v47 = vrot.slane %v4119_v43, 7 }
 0x252   : > { %vm1648_vm7 = vcmask 1043459   ;;  %v1254_v7 = vadd.f32 %v1253_v3, %v1252_v31  ;;  %v1352_v36 = vmul.f32 %v4119_v43, %v3900_v20  ;;  %v1358_v46 = vmul.f32 %v4127_v49, %v3940_v34 }
 0x253   : > { %vm1651_vm8 = vcmask 1044484   ;;  %v1296_v30 = vadd.f32 %v1295_v10, %v1294_v4  ;;  %v1364_v2 = vmul.f32 %v4131_v27, %v3973_v53  ;;  %v1370_v50 = vmul.f32 %v4138_v17, %v4045_v22 }
 0x254   : > { %v1376_v55 = vmul.f32 %v4145_v62, %v1170_v29  ;;  %vm1654_vm9 = vcmask 1045509   ;;  %v1382_v39 = vmul.f32 %v4148_v32, %v1212_v51  ;;  %v1388_v48 = vmul.f32 %v4151_v9, %v1254_v7 }
 0x255   : > { %v1402_v44 = vpack.c.bf16 %v1352_v36, %v1352_v36  ;;  %v1408_v20 = vpack.c.bf16 %v1358_v46, %v1358_v46  ;;  %vm1657_vm3 = vcmask 1046534   ;;  %v1394_v34 = vmul.f32 %v4154_v47, %v1296_v30 }
 0x256   : > { %v1414_v45 = vpack.c.bf16 %v1364_v2, %v1364_v2  ;;  %v1420_v5 = vpack.c.bf16 %v1370_v50, %v1370_v50  ;;  %v1426_v58 = vpack.c.bf16 %v1376_v55, %v1376_v55  ;;  %vm1660_vm10 = vcmask 1047559  }
 0x257   : > { %v1432_v53 = vpack.c.bf16 %v1382_v39, %v1382_v39  ;;  %v1438_v31 = vpack.c.bf16 %v1388_v48, %v1388_v48  ;;  %v1594_v4 = vunpack.c.l.b16 %v1402_v44  ;;  %v1600_v22 = vunpack.c.l.b16 %v1408_v20 }
 0x258   : > { %v1444_v3 = vpack.c.bf16 %v1394_v34, %v1394_v34  ;;  %v1606_v29 = vunpack.c.l.b16 %v1414_v45  ;;  %v1612_v10 = vunpack.c.l.b16 %v1420_v5  ;;  %v1618_v40 = vunpack.c.l.b16 %v1426_v58 }
 0x259   : > { %v1624_v51 = vunpack.c.l.b16 %v1432_v53  ;;  %v1630_v8 = vunpack.c.l.b16 %v1438_v31  ;;  %v1662_v7 = vrot.slane %v1600_v22, 7  ;;  %v4461_v36 = vrot.slane %v4002_v59, 1 }
 0x25a   : > { %v1636_v30 = vunpack.c.l.b16 %v1444_v3  ;;  %v1664_v2 = vrot.slane %v1606_v29, 6  ;;  %v1666_v50 = vrot.slane %v1612_v10, 5  ;;  %v1668_v55 = vrot.slane %v1618_v40, 4 }
 0x25b   : > { %v1184_v46 = vadd.f32 %v4461_v36, %v4002_v59  ;;  %v1663_v39 = vsel %vm1642_vm5, %v1662_v7, %v1594_v4  ;;  %v1670_v48 = vrot.slane %v1624_v51, 3  ;;  %v1672_v44 = vrot.slane %v1630_v8, 2 }
 0x25c   : > { %v1225_v20 = vrot.slane %v4070_v1, 1  ;;  %v1665_v34 = vsel %vm1645_vm6, %v1664_v2, %v1663_v39  ;;  %v1674_v45 = vrot.slane %v1636_v30, 1  ;;  %v1265_v5 = vrot.slane %v4094_v35, 2 }
 0x25d   : > { %v1307_v58 = vrot.slane %v4122_v42, 2  ;;  %v1667_v53 = vsel %vm1648_vm7, %v1666_v50, %v1665_v34  ;;  %v1354_v40 = vmul.f32 %v4119_v43, %v3908_v26  ;;  %v1360_v31 = vmul.f32 %v4127_v49, %v3948_v38 }
 0x25e   : > { %v1226_v59 = vadd.f32 %v1225_v20, %v4070_v1  ;;  %v1669_v8 = vsel %vm1651_vm8, %v1668_v55, %v1667_v53  ;;  %v1266_v4 = vadd.f32 %v1265_v5, %v4094_v35  ;;  %v1366_v3 = vmul.f32 %v4131_v27, %v3981_v57 }
 0x25f   : > { %v1308_v22 = vadd.f32 %v1307_v58, %v4122_v42  ;;  %v1671_v29 = vsel %vm1654_vm9, %v1670_v48, %v1669_v8  ;;  %v1372_v1 = vmul.f32 %v4138_v17, %v4049_v15  ;;  %v1378_v10 = vmul.f32 %v4145_v62, %v1184_v46 }
 0x260   : > { %v1384_v26 = vmul.f32 %v4148_v32, %v1226_v59  ;;  %v1673_v38 = vsel %vm1657_vm3, %v1672_v44, %v1671_v29  ;;  %v1267_v51 = vrot.slane %v1266_v4, 1  ;;  %v1404_v36 = vpack.c.bf16 %v1354_v40, %v1354_v40 }
 0x261   : > { %v1309_v7 = vrot.slane %v1308_v22, 1  ;;  %v1675_v35 = vsel %vm1660_vm10, %v1674_v45, %v1673_v38  ;;  %v1410_v42 = vpack.c.bf16 %v1360_v31, %v1360_v31  ;;  %v1416_v30 = vpack.c.bf16 %v1366_v3, %v1366_v3 }
 0x262   : > { %v1422_v2 = vpack.c.bf16 %v1372_v1, %v1372_v1  ;;  %v1733_v57 = vpack.c.b16 %v1675_v35, %v1675_v35  ;;  %v1268_v50 = vadd.f32 %v1267_v51, %v1266_v4  ;;  %v1428_v39 = vpack.c.bf16 %v1378_v10, %v1378_v10 }
 0x263   : > { %v1310_v55 = vadd.f32 %v1309_v7, %v1308_v22  ;;  %v1434_v48 = vpack.c.bf16 %v1384_v26, %v1384_v26  ;;  %v1596_v15 = vunpack.c.l.b16 %v1404_v36  ;;  %v1602_v20 = vunpack.c.l.b16 %v1410_v42 }
 0x264   : > { %v1608_v46 = vunpack.c.l.b16 %v1416_v30  ;;  %2256 = vmatprep.mubr.bf16.mxu0 %v1733_v57  ;;  %v1390_v34 = vmul.f32 %v4151_v9, %v1268_v50  ;;  %v1614_v5 = vunpack.c.l.b16 %v1422_v2  ;;  %v1620_v58 = vunpack.c.l.b16 %v1428_v39 }
 0x265   : > { %v1396_v44 = vmul.f32 %v4154_v47, %v1310_v55  ;;  %v1626_v53 = vunpack.c.l.b16 %v1434_v48  ;;  %v1690_v45 = vrot.slane %v1602_v20, 7  ;;  %v1246_v40 = vrot.slane %v4102_v18, 1 }
 0x266   : > { %v1692_v59 = vrot.slane %v1608_v46, 6  ;;  %v1440_v31 = vpack.c.bf16 %v1390_v34, %v1390_v34  ;;  %v1694_v4 = vrot.slane %v1614_v5, 5  ;;  %v1696_v22 = vrot.slane %v1620_v58, 4 }
 0x267   : > { %v1446_v8 = vpack.c.bf16 %v1396_v44, %v1396_v44  ;;  %v1691_v3 = vsel %vm1642_vm5, %v1690_v45, %v1596_v15  ;;  %v1698_v29 = vrot.slane %v1626_v53, 3  ;;  %v1247_v1 = vadd.f32 %v1246_v40, %v4102_v18 }
 0x268   : > { %v1288_v10 = vrot.slane %v4133_v41, 1  ;;  %v1632_v26 = vunpack.c.l.b16 %v1440_v31  ;;  %v1693_v51 = vsel %vm1645_vm6, %v1692_v59, %v1691_v3  ;;  %v1351_v7 = vmul.f32 %v4119_v43, %v3898_v19 }
 0x269   : > { %v1638_v38 = vunpack.c.l.b16 %v1446_v8  ;;  %v1695_v36 = vsel %vm1648_vm7, %v1694_v4, %v1693_v51  ;;  %v1357_v42 = vmul.f32 %v4127_v49, %v3938_v33  ;;  %v1363_v30 = vmul.f32 %v4131_v27, %v3971_v52 }
 0x26a   : > { %v1289_v35 = vadd.f32 %v1288_v10, %v4133_v41  ;;  %v1697_v18 = vsel %vm1651_vm8, %v1696_v22, %v1695_v36  ;;  %v1700_v2 = vrot.slane %v1632_v26, 2  ;;  %v1369_v50 = vmul.f32 %v4138_v17, %v4043_v12 }
 0x26b   : > { %v1702_v57 = vrot.slane %v1638_v38, 1  ;;  %v1699_v55 = vsel %vm1654_vm9, %v1698_v29, %v1697_v18  ;;  %v1375_v19 = vmul.f32 %v4145_v62, %v4010_v16  ;;  %v1381_v41 = vmul.f32 %v4148_v32, %v4084_v23 }
 0x26c   : > { %v1387_v33 = vmul.f32 %v4151_v9, %v1247_v1  ;;  %v1701_v39 = vsel %vm1657_vm3, %v1700_v2, %v1699_v55  ;;  %v1393_v52 = vmul.f32 %v4154_v47, %v1289_v35  ;;  %v1401_v48 = vpack.c.bf16 %v1351_v7, %v1351_v7 }
 0x26d   : > { %v1407_v15 = vpack.c.bf16 %v1357_v42, %v1357_v42  ;;  %v1703_v20 = vsel %vm1660_vm10, %v1702_v57, %v1701_v39  ;;  %v1413_v46 = vpack.c.bf16 %v1363_v30, %v1363_v30  ;;  %v1419_v12 = vpack.c.bf16 %v1369_v50, %v1369_v50 }
 0x26e   : > { %v1425_v34 = vpack.c.bf16 %v1375_v19, %v1375_v19  ;;  %v1735_v44 = vpack.c.b16 %v1703_v20, %v1703_v20  ;;  %v1431_v5 = vpack.c.bf16 %v1381_v41, %v1381_v41  ;;  %v1437_v58 = vpack.c.bf16 %v1387_v33, %v1387_v33  ;;  %v3166_v20 = vld [vmem:[%s3625_s17 + $0x270] ss:$8 sps:$4 sm:$0xff]  }
 0x26f   : > { %v1443_v16 = vpack.c.bf16 %v1393_v52, %v1393_v52  ;;  %v1593_v53 = vunpack.c.l.b16 %v1401_v48  ;;  %v1599_v45 = vunpack.c.l.b16 %v1407_v15  ;;  %v1605_v23 = vunpack.c.l.b16 %v1413_v46 }
 0x270   : > { %v1611_v59 = vunpack.c.l.b16 %v1419_v12  ;;  %2297 = vmatprep.mubr.bf16.mxu1 %v1735_v44  ;;  %v1617_v40 = vunpack.c.l.b16 %v1425_v34  ;;  %v1623_v31 = vunpack.c.l.b16 %v1431_v5  ;;  %v1629_v8 = vunpack.c.l.b16 %v1437_v58 }
 0x271   : > { %v1635_v4 = vunpack.c.l.b16 %v1443_v16  ;;  %v1641_v22 = vrot.slane %v1599_v45, 7  ;;  %v1644_v3 = vrot.slane %v1605_v23, 6  ;;  %v1260_v1 = vrot.slane %v4105_v0, 1 }
 0x272   : > { %v1647_v29 = vrot.slane %v1611_v59, 5  ;;  %v1650_v10 = vrot.slane %v1617_v40, 4  ;;  %v1653_v26 = vrot.slane %v1623_v31, 3  ;;  %v1656_v38 = vrot.slane %v1629_v8, 2 }
 0x273   : > { %v1659_v51 = vrot.slane %v1635_v4, 1  ;;  %v1643_v7 = vsel %vm1642_vm5, %v1641_v22, %v1593_v53  ;;  %v1261_v36 = vadd.f32 %v1260_v1, %v4105_v0  ;;  %v1302_v35 = vrot.slane %v4135_v54, 1  ;;  %v3171_v53 = vld [vmem:[%s3625_s17 + $0x264] ss:$8 sps:$4 sm:$0xff]  }
 0x274   : > { %v1353_v42 = vmul.f32 %v4119_v43, %v3906_v24  ;;  %v1646_v30 = vsel %vm1645_vm6, %v1644_v3, %v1643_v7  ;;  %v1359_v18 = vmul.f32 %v4127_v49, %v3946_v37  ;;  %v1365_v2 = vmul.f32 %v4131_v27, %v3979_v56 }
 0x275   : > { %v1371_v57 = vmul.f32 %v4138_v17, %v4047_v13  ;;  %v1649_v50 = vsel %vm1648_vm7, %v1647_v29, %v1646_v30  ;;  %v1303_v0 = vadd.f32 %v1302_v35, %v4135_v54  ;;  %v1377_v55 = vmul.f32 %v4145_v62, %v4020_v21  ;;  %v3174_v35 = vld [vmem:[%s3625_s17 + $0x254] ss:$8 sps:$4 sm:$0xff]  }
 0x276   : > { %v1383_v24 = vmul.f32 %v4148_v32, %v4086_v60  ;;  %v1652_v19 = vsel %vm1651_vm8, %v1650_v10, %v1649_v50  ;;  %v1389_v37 = vmul.f32 %v4151_v9, %v1261_v36  ;;  %v1403_v41 = vpack.c.bf16 %v1353_v42, %v1353_v42 }
 0x277   : > { %v1409_v56 = vpack.c.bf16 %v1359_v18, %v1359_v18  ;;  %v1655_v33 = vsel %vm1654_vm9, %v1653_v26, %v1652_v19  ;;  %v1395_v13 = vmul.f32 %v4154_v47, %v1303_v0  ;;  %v1415_v39 = vpack.c.bf16 %v1365_v2, %v1365_v2  ;;  %v3169_v26 = vld [vmem:[%s3625_s17 + $0x260] ss:$8 sps:$4 sm:$0xff]   ;;  %v4463_v0 = vld [vmem:[#allocation24_spill] sm:$0xff] }
 0x278   : > { %v1421_v52 = vpack.c.bf16 %v1371_v57, %v1371_v57  ;;  %v1658_v54 = vsel %vm1657_vm3, %v1656_v38, %v1655_v33  ;;  %v1427_v48 = vpack.c.bf16 %v1377_v55, %v1377_v55  ;;  %v1433_v21 = vpack.c.bf16 %v1383_v24, %v1383_v24  ;;  %v3177_v33 = vld [vmem:[%s3625_s17 + $0x244] ss:$8 sps:$4 sm:$0xff]  }
 0x279   : > { %v1439_v15 = vpack.c.bf16 %v1389_v37, %v1389_v37  ;;  %v1661_v60 = vsel %vm1660_vm10, %v1659_v51, %v1658_v54  ;;  %v1445_v46 = vpack.c.bf16 %v1395_v13, %v1395_v13  ;;  %v1595_v12 = vunpack.c.l.b16 %v1403_v41  ;;  %v3172_v37 = vld [vmem:[%s3625_s17 + $0x250] ss:$8 sps:$4 sm:$0xff]  }
 0x27a   : > { %v1601_v34 = vunpack.c.l.b16 %v1409_v56  ;;  %v1732_v44 = vpack.c.b16 %v1661_v60, %v1661_v60  ;;  %v1607_v5 = vunpack.c.l.b16 %v1415_v39  ;;  %v1613_v58 = vunpack.c.l.b16 %v1421_v52 }
 0x27b   : > { %v1619_v16 = vunpack.c.l.b16 %v1427_v48  ;;  %v1625_v45 = vunpack.c.l.b16 %v1433_v21  ;;  %v1631_v23 = vunpack.c.l.b16 %v1439_v15  ;;  %v1637_v59 = vunpack.c.l.b16 %v1445_v46 }
 0x27c   : > { %v1676_v40 = vrot.slane %v1601_v34, 7  ;;  %2257 = vmatmul.mubr.bf16.vlgmr.msra.gmra.mxu0 %v1732_v44  ;;  %v1678_v31 = vrot.slane %v1607_v5, 6  ;;  %v1680_v8 = vrot.slane %v1613_v58, 5  ;;  %v1281_v22 = vrot.slane %v4110_v11, 1  ;;  %v3175_v44 = vld [vmem:[%s3625_s17 + $0x240] ss:$8 sps:$4 sm:$0xff]  }
 0x27d   : > { %v1682_v4 = vrot.slane %v1619_v16, 4  ;;  %v1684_v29 = vrot.slane %v1625_v45, 3  ;;  %v1686_v1 = vrot.slane %v1631_v23, 2  ;;  %v1688_v10 = vrot.slane %v1637_v59, 1  ;;  %2307 = vmatpush1.bf16.msra.mxu0 %v3166_v20 }
 0x27e   : > { %v1677_v3 = vsel %vm1642_vm5, %v1676_v40, %v1595_v12  ;;  %v1282_v51 = vadd.f32 %v1281_v22, %v4110_v11  ;;  %v1323_v7 = vrot.slane %v4142_v25, 1  ;;  %v1356_v36 = vmul.f32 %v4119_v43, %v3912_v28  ;;  %2308 = vmatprep.subr.bf16.mxu0 %v3171_v53  ;;  %v4462_v28 = vld [vmem:[#allocation21_spill] sm:$0xff] }
 0x27f   : > { %v1679_v38 = vsel %vm1645_vm6, %v1678_v31, %v1677_v3  ;;  %v1362_v30 = vmul.f32 %v4127_v49, %v3952_v14  ;;  %v1368_v18 = vmul.f32 %v4131_v27, %v3985_v63  ;;  %v1374_v2 = vmul.f32 %v4138_v17, %v4055_v61  ;;  %v3180_v53 = vld [vmem:[%s3625_s17 + $0x234] ss:$8 sps:$4 sm:$0xff]  }
 0x280   : > { %v1681_v42 = vsel %vm1648_vm7, %v1680_v8, %v1679_v38  ;;  %v1324_v57 = vadd.f32 %v1323_v7, %v4142_v25  ;;  %v1380_v50 = vmul.f32 %v4145_v62, %v4462_v28  ;;  %v1386_v55 = vmul.f32 %v4148_v32, %v4463_v0  ;;  %v4466_v38 = vld [vmem:[#allocation18_spill] sm:$0xff] }
 0x281   : > { %v1683_v11 = vsel %vm1651_vm8, %v1682_v4, %v1681_v42  ;;  %v1392_v14 = vmul.f32 %v4151_v9, %v1282_v51  ;;  %v1406_v19 = vpack.c.bf16 %v1356_v36, %v1356_v36  ;;  %v1412_v63 = vpack.c.bf16 %v1362_v30, %v1362_v30  ;;  %2309 = vmatpush1.bf16.msra.mxu0 %v3169_v26  ;;  %v3178_v26 = vld [vmem:[%s3625_s17 + $0x230] ss:$8 sps:$4 sm:$0xff]   ;;  %v4468_v36 = vld [vmem:[#allocation22_spill] sm:$0xff] }
 0x282   : > { %v1685_v24 = vsel %vm1654_vm9, %v1684_v29, %v1683_v11  ;;  %v1398_v41 = vmul.f32 %v4154_v47, %v1324_v57  ;;  %v1418_v56 = vpack.c.bf16 %v1368_v18, %v1368_v18  ;;  %v1424_v25 = vpack.c.bf16 %v1374_v2, %v1374_v2  ;;  %2310 = vmatprep.subr.bf16.mxu0 %v3174_v35  ;;  %v4465_v29 = vld [vmem:[#allocation17_spill] sm:$0xff]  ;;  %v3183_v30 = vld [vmem:[%s3625_s17 + $0x224] ss:$8 sps:$4 sm:$0xff]  }
 0x283   : > { %v1687_v61 = vsel %vm1657_vm3, %v1686_v1, %v1685_v24  ;;  %v1430_v39 = vpack.c.bf16 %v1380_v50, %v1380_v50  ;;  %v1436_v52 = vpack.c.bf16 %v1386_v55, %v1386_v55  ;;  %v1442_v54 = vpack.c.bf16 %v1392_v14, %v1392_v14  ;;  %v4469_v18 = vld [vmem:[#allocation20_spill] sm:$0xff]  ;;  %v4470_v2 = vld [vmem:[#allocation23_spill] sm:$0xff]  ;;  %v4471_v57 = vld [vmem:[#allocation25_spill] sm:$0xff] }
 0x284   : > { %v1689_v13 = vsel %vm1660_vm10, %v1688_v10, %v1687_v61  ;;  %v1448_v21 = vpack.c.bf16 %v1398_v41, %v1398_v41  ;;  %v1598_v15 = vunpack.c.l.b16 %v1406_v19  ;;  %v1604_v20 = vunpack.c.l.b16 %v1412_v63  ;;  %v3181_v19 = vld [vmem:[%s3625_s17 + $0x220] ss:$8 sps:$4 sm:$0xff]   ;;  %v3186_v61 = vld [vmem:[%s3625_s17 + $0x214] ss:$8 sps:$4 sm:$0xff]  }
 0x285   : > { %v1734_v48 = vpack.c.b16 %v1689_v13, %v1689_v13  ;;  %v1610_v60 = vunpack.c.l.b16 %v1418_v56  ;;  %v1616_v46 = vunpack.c.l.b16 %v1424_v25  ;;  %v1622_v12 = vunpack.c.l.b16 %v1430_v39  ;;  %2311 = vmatpush1.bf16.msra.mxu0 %v3172_v37 }
 0x286   : > { %v1628_v34 = vunpack.c.l.b16 %v1436_v52  ;;  %v1634_v5 = vunpack.c.l.b16 %v1442_v54  ;;  %v1640_v58 = vunpack.c.l.b16 %v1448_v21  ;;  %v1718_v16 = vrot.slane %v1604_v20, 7  ;;  %2312 = vmatprep.subr.bf16.mxu0 %v3177_v33 }
 0x287   : > { %2298 = vmatmul.mubr.bf16.vlgmr.msra.gmra.mxu1 %v1734_v48  ;;  %v4464_v45 = vrot.slane %v4140_v6, 1  ;;  %v1720_v59 = vrot.slane %v1610_v60, 6  ;;  %v1722_v40 = vrot.slane %v1616_v46, 5  ;;  %v1724_v31 = vrot.slane %v1622_v12, 4  ;;  %v3189_v60 = vld [vmem:[%s3625_s17 + $0x204] ss:$8 sps:$4 sm:$0xff]  }
 0x288   : > { %v1726_v8 = vrot.slane %v1628_v34, 3  ;;  %v1719_v4 = vsel %vm1642_vm5, %v1718_v16, %v1598_v15  ;;  %v1728_v22 = vrot.slane %v1634_v5, 2  ;;  %v1730_v3 = vrot.slane %v1640_v58, 1  ;;  %v3184_v15 = vld [vmem:[%s3625_s17 + $0x210] ss:$8 sps:$4 sm:$0xff]  }
 0x289   : > { %v1317_v23 = vadd.f32 %v4464_v45, %v4140_v6  ;;  %v1355_v1 = vmul.f32 %v4119_v43, %v4465_v29  ;;  %v1721_v10 = vsel %vm1645_vm6, %v1720_v59, %v1719_v4  ;;  %2313 = vmatpush1.bf16.msra.mxu0 %v3175_v44  ;;  %v1361_v51 = vmul.f32 %v4127_v49, %v4466_v38  ;;  %v4467_v6 = vld [vmem:[#allocation19_spill] sm:$0xff]  ;;  %v3196_v29 = vld [vmem:[%s3625_s17 + $0x2d0] ss:$8 sps:$4 sm:$0xff]  }
 0x28a   : > { %v1367_v7 = vmul.f32 %v4131_v27, %v4467_v6  ;;  %v1373_v35 = vmul.f32 %v4138_v17, %v4468_v36  ;;  %v1723_v42 = vsel %vm1648_vm7, %v1722_v40, %v1721_v10  ;;  %2314 = vmatprep.subr.bf16.mxu0 %v3180_v53  ;;  %v1379_v43 = vmul.f32 %v4145_v62, %v4469_v18  ;;  %v3187_v53 = vld [vmem:[%s3625_s17 + $0x200] ss:$8 sps:$4 sm:$0xff]   ;;  %v3195_v4 = vld [vmem:[%s3625_s17 + $0x2e4] ss:$8 sps:$4 sm:$0xff]   ;;  %v3202_v38 = vld [vmem:[%s3625_s17 + $0x2b0] ss:$8 sps:$4 sm:$0xff]  }
 0x28b   : > { %v1385_v11 = vmul.f32 %v4148_v32, %v4470_v2  ;;  %v1391_v49 = vmul.f32 %v4151_v9, %v4471_v57  ;;  %v1725_v28 = vsel %vm1651_vm8, %v1724_v31, %v1723_v42  ;;  %v1397_v27 = vmul.f32 %v4154_v47, %v1317_v23  ;;  %v3192_v23 = vld [vmem:[%s3625_s17 + $0x2f4] ss:$8 sps:$4 sm:$0xff]   ;;  %v3199_v10 = vld [vmem:[%s3625_s17 + $0x2c0] ss:$8 sps:$4 sm:$0xff]   ;;  %v3208_v36 = vld [vmem:[%s3625_s17 + $0x290] ss:$8 sps:$4 sm:$0xff]  }
 0x28c   : > { %v1405_v17 = vpack.c.bf16 %v1355_v1, %v1355_v1  ;;  %v1411_v50 = vpack.c.bf16 %v1361_v51, %v1361_v51  ;;  %v1727_v0 = vsel %vm1654_vm9, %v1726_v8, %v1725_v28  ;;  %v1417_v55 = vpack.c.bf16 %v1367_v7, %v1367_v7  ;;  %v3190_v8 = vld [vmem:[%s3625_s17 + $0x2f0] ss:$8 sps:$4 sm:$0xff]   ;;  %v3201_v1 = vld [vmem:[%s3625_s17 + $0x2c4] ss:$8 sps:$4 sm:$0xff]   ;;  %v3205_v6 = vld [vmem:[%s3625_s17 + $0x2a0] ss:$8 sps:$4 sm:$0xff]  }
 0x28d   : > { %v1423_v24 = vpack.c.bf16 %v1373_v35, %v1373_v35  ;;  %v1429_v14 = vpack.c.bf16 %v1379_v43, %v1379_v43  ;;  %v1729_v62 = vsel %vm1657_vm3, %v1728_v22, %v1727_v0  ;;  %2315 = vmatpush1.bf16.msra.mxu0 %v3178_v26  ;;  %v1435_v32 = vpack.c.bf16 %v1385_v11, %v1385_v11  ;;  %v3193_v22 = vld [vmem:[%s3625_s17 + $0x2e0] ss:$8 sps:$4 sm:$0xff]   ;;  %v3204_v26 = vld [vmem:[%s3625_s17 + $0x2b4] ss:$8 sps:$4 sm:$0xff]   ;;  %v3207_v51 = vld [vmem:[%s3625_s17 + $0x2a4] ss:$8 sps:$4 sm:$0xff]  }
 0x28e   : > { %v1441_v63 = vpack.c.bf16 %v1391_v49, %v1391_v49  ;;  %v1447_v37 = vpack.c.bf16 %v1397_v27, %v1397_v27  ;;  %v1731_v9 = vsel %vm1660_vm10, %v1730_v3, %v1729_v62  ;;  %2316 = vmatprep.subr.bf16.mxu0 %v3183_v30  ;;  %v1597_v47 = vunpack.c.l.b16 %v1405_v17  ;;  %v3198_v3 = vld [vmem:[%s3625_s17 + $0x2d4] ss:$8 sps:$4 sm:$0xff]   ;;  %v3213_v35 = vld [vmem:[%s3625_s17 + $0x284] ss:$8 sps:$4 sm:$0xff]   ;;  %v3211_v42 = vld [vmem:[%s3625_s17 + $0x280] ss:$8 sps:$4 sm:$0xff]  }
 0x28f   : > { %v1603_v41 = vunpack.c.l.b16 %v1411_v50  ;;  %v1609_v56 = vunpack.c.l.b16 %v1417_v55  ;;  %v1737_v25 = vpack.c.b16 %v1731_v9, %v1731_v9  ;;  %v1615_v33 = vunpack.c.l.b16 %v1423_v24  ;;  %v3210_v7 = vld [vmem:[%s3625_s17 + $0x294] ss:$8 sps:$4 sm:$0xff]  }
 0x290   : > { %v1621_v13 = vunpack.c.l.b16 %v1429_v14  ;;  %v1627_v39 = vunpack.c.l.b16 %v1435_v32  ;;  %v1633_v52 = vunpack.c.l.b16 %v1441_v63  ;;  %v1639_v54 = vunpack.c.l.b16 %v1447_v37  ;;  %v1399_v50 = vld [vmem:[#allocation2] sm:$0xff]  ;;  %v1400_v14 = vld [vmem:[#allocation2 + $0x8] sm:$0xff] }
 0x291   : > { %v1704_v48 = vrot.slane %v1603_v41, 7  ;;  %v1706_v21 = vrot.slane %v1609_v56, 6  ;;  %2338 = vmatprep.mubr.bf16.mxu0 %v1737_v25  ;;  %2317 = vmatpush1.bf16.msra.mxu0 %v3181_v19  ;;  %v1708_v20 = vrot.slane %v1615_v33, 5 }
 0x292   : > { %2318 = vmatprep.subr.bf16.mxu0 %v3186_v61  ;;  %v1712_v12 = vrot.slane %v1627_v39, 3  ;;  %v1710_v44 = vrot.slane %v1621_v13, 4  ;;  %v1714_v5 = vrot.slane %v1633_v52, 2  ;;  %v1716_v16 = vrot.slane %v1639_v54, 1 }
 0x293   : > { %v1705_v46 = vsel %vm1642_vm5, %v1704_v48, %v1597_v47 }
 0x294   : > { %v1707_v34 = vsel %vm1645_vm6, %v1706_v21, %v1705_v46 }
 0x295   : > { %v1709_v58 = vsel %vm1648_vm7, %v1708_v20, %v1707_v34  ;;  %2319 = vmatpush1.bf16.msra.mxu0 %v3184_v15 }
 0x296   : > { %v1711_v45 = vsel %vm1651_vm8, %v1710_v44, %v1709_v58  ;;  %2320 = vmatprep.subr.bf16.mxu0 %v3189_v60 }
 0x297   : > { %v1713_v59 = vsel %vm1654_vm9, %v1712_v12, %v1711_v45 }
 0x298   : > { %v1715_v40 = vsel %vm1657_vm3, %v1714_v5, %v1713_v59 }
 0x299   : > { %v1717_v31 = vsel %vm1660_vm10, %v1716_v16, %v1715_v40  ;;  %2321 = vmatpush1.bf16.msra.mxu0 %v3187_v53 }
 0x29a   : > { %2322 = vmatprep.subr.bf16.mxu0 %v3192_v23  ;;  %v1736_v30 = vpack.c.b16 %v1717_v31, %v1717_v31 }
 0x29d   : > { %2323 = vmatpush2.bf16.msra.mxu0 %v3190_v8 }
 0x29e   : > { %2324 = vmatprep.subr.bf16.mxu0 %v3195_v4 }
 0x2a1   : > { %2325 = vmatpush2.bf16.msra.mxu0 %v3193_v22 }
 0x2a2   : > { %2326 = vmatprep.subr.bf16.mxu0 %v3198_v3 }
 0x2a5   : > { %2327 = vmatpush2.bf16.msra.mxu0 %v3196_v29 }
 0x2a6   : > { %2328 = vmatprep.subr.bf16.mxu0 %v3201_v1 }
 0x2a9   : > { %2329 = vmatpush2.bf16.msra.mxu0 %v3199_v10 }
 0x2aa   : > { %2330 = vmatprep.subr.bf16.mxu0 %v3204_v26 }
 0x2ad   : > { %2331 = vmatpush2.bf16.msra.mxu0 %v3202_v38 }
 0x2ae   : > { %2332 = vmatprep.subr.bf16.mxu0 %v3207_v51 }
 0x2b1   : > { %2333 = vmatpush2.bf16.msra.mxu0 %v3205_v6 }
 0x2b2   : > { %2334 = vmatprep.subr.bf16.mxu0 %v3210_v7 }
 0x2b5   : > { %2335 = vmatpush2.bf16.msra.mxu0 %v3208_v36 }
 0x2b6   : > { %2336 = vmatprep.subr.bf16.mxu0 %v3213_v35 }
 0x2b9   : > { %2337 = vmatpush2.bf16.msra.mxu0 %v3211_v42 }
 0x2bc   : > { %2339 = vmatmul.mubr.bf16.vlgmr.msra.gmra.mxu0 %v1736_v30 }
 0x33c   : > { %v2258_v18 = vpop.f32.mrf.mxu0 }
 0x33e   : > { %v2260_v43 = vpop.f32.mrf.mxu0 }
 0x340   : > { %v2262_v2 = vpop.f32.mrf.mxu0 }
 0x342   : > { %v2263_v11 = vpop.f32.mrf.mxu0 }
 0x347   : > { %v2299_v57 = vpop.f32.mrf.mxu1 }
 0x348   : > { %v2300_v17 = vadd.f32 %v2299_v57, %v2258_v18 }
 0x349   : > { %v2301_v49 = vpop.f32.mrf.mxu1 }
 0x34a   : > { %v2302_v55 = vadd.f32 %v2301_v49, %v2260_v43 }
 0x34b   : > { %v2303_v28 = vpop.f32.mrf.mxu1 }
 0x34d   : > { %v2304_v27 = vpop.f32.mrf.mxu1 }
 0x37c   : > { %v2340_v0 = vpop.f32.mrf.mxu0 }
 0x37d   : > { %v2341_v24 = vadd.f32 %v2340_v0, %v2300_v17 }
 0x37e   : > { %v2342_v62 = vpop.f32.mrf.mxu0 }
 0x37f   : > { %v2347_v19 = vadd.f32 %v2341_v24, %v1399_v50  ;;  %v2343_v32 = vadd.f32 %v2342_v62, %v2302_v55  ;;  %2354 = sbr.rel (%p2887_p4) target bundleno = 1644 (0x66c), region = 80 }
 0x380   : > { %v2344_v63 = vpop.f32.mrf.mxu0 }
 0x381   : > { %2349 = vst [vmem:[#allocation2] sm:$0xff] %v2347_v19  ;;  %v2348_v37 = vadd.f32 %v2343_v32, %v1400_v14 }
 0x382   : > { %v2345_v9 = vpop.f32.mrf.mxu0 }
 0x383   : > { %2350 = vst [vmem:[#allocation2 + $0x8] sm:$0xff] %v2348_v37 }
 0x384   : > { %v3216_v61 = vld [vmem:[%s4426_s4 + $0x78] sm:$0xff]   ;;  %v3218_v41 = vld [vmem:[%s4426_s4 + $0x70] sm:$0xff]   ;;  %v3452_v56 = vmov 0.0   ;;  %v3220_v33 = vld [vmem:[%s4426_s4 + $0x68] sm:$0xff]   ;;  %vm3453_vm11 = vmmov 0   ;;  %vm2591_vm14 = vcmask 523264  }
 0x385   : > { %v3217_v47 = vld [vmem:[%s4426_s4 + $0x38] sm:$0xff]   ;;  %2917 = vmatprep.subr.bf16.mxu0 %v3216_v61  ;;  %2944 = vmatprep.subr.bf16.mxu1 %v3452_v56  ;;  %v3219_v25 = vld [vmem:[%s4426_s4 + $0x30] sm:$0xff]   ;;  %v3221_v13 = vld [vmem:[%s4426_s4 + $0x28] sm:$0xff]   ;;  %vm2635_vm12 = vcmask 31744  }
 0x386   : > { %2918 = vmatpush3.bf16.msra.mxu0 %v3217_v47  ;;  %v3222_v39 = vld [vmem:[%s4426_s4 + $0x60] sm:$0xff]   ;;  %v3224_v54 = vld [vmem:[%s4426_s4 + $0x58] sm:$0xff]   ;;  %v3226_v20 = vld [vmem:[%s4426_s4 + $0x50] sm:$0xff]   ;;  %2952 = vmatprep.mubr.msk.bf16.mxu1 %vm3453_vm11, %v3452_v56 }
 0x387   : > { %2919 = vmatprep.subr.bf16.mxu0 %v3218_v41  ;;  %v3223_v52 = vld [vmem:[%s4426_s4 + $0x20] sm:$0xff]   ;;  %v4472_v48 = vld [vmem:[#allocation15_spill] sm:$0xff]  ;;  %v2357_v46 = vld [vmem:[#allocation7] sm:$0x3] }
 0x388   : > { %v2365_v21 = vsub.s32 1, %v4472_v48  ;;  %v3225_v15 = vld [vmem:[%s4426_s4 + $0x18] sm:$0xff]   ;;  %v3227_v12 = vld [vmem:[%s4426_s4 + $0x10] sm:$0xff]   ;;  %v2355_v44 = vld [vmem:[#allocation2] sm:$0xff] }
 0x389   : > { %v3232_v5 = vld [vmem:[%s4428_s6 + $0x18] sm:$0xff]   ;;  %v3228_v45 = vld [vmem:[%s4426_s4 + $0x48] sm:$0xff]   ;;  %v3230_v8 = vld [vmem:[%s4426_s4 + $0x40] sm:$0xff]  }
 0x38a   : > { %2920 = vmatpush3.bf16.msra.mxu0 %v3219_v25  ;;  %v2356_v60 = vld [vmem:[#allocation2 + $0x8] sm:$0xff]  ;;  %v2366_v34 = vrot.slane %v2357_v46, %v2365_v21  ;;  %v4473_v58 = vld [vmem:[#allocation16_spill] sm:$0xff]  ;;  %2945 = vmatpush3.bf16.msra.mxu1 %v3232_v5  ;;  %v3233_v29 = vld [vmem:[%s4428_s6 + $0x10] sm:$0xff]  }
 0x38b   : > { %2921 = vmatprep.subr.bf16.mxu0 %v3220_v33  ;;  %v2362_v16 = vrot.slane %v2357_v46, %v4473_v58  ;;  %2946 = vmatprep.subr.bf16.mxu1 %v3452_v56  ;;  %v3229_v40 = vld [vmem:[%s4426_s4 + $0x8] sm:$0xff]   ;;  %v3231_v22 = vld [vmem:[%s4426_s4] sm:$0xff]   ;;  %v2888_v38 = vld [vmem:[#allocation8] ss:$0 sm:$0xff] }
 0x38c   : > { %v2370_v53 = vadd.f32 %v2366_v34, %v2356_v60  ;;  %v3234_v1 = vld [vmem:[%s4428_s6 + $0x8] sm:$0xff]   ;;  %v3235_v10 = vld [vmem:[%s4428_s6] sm:$0xff]   ;;  %v2905_v18 = vld [vmem:[#allocation10] ss:$0 sm:$0xff] }
 0x38d   : > { %v2369_v59 = vadd.f32 %v2362_v16, %v2355_v44 }
 0x38e   : > { %2922 = vmatpush3.bf16.msra.mxu0 %v3221_v13  ;;  %v2372_v23 = vmax.f32 %v2370_v53, 0.0  ;;  %2947 = vmatpush3.bf16.msra.mxu1 %v3233_v29 }
 0x38f   : > { %2923 = vmatprep.subr.bf16.mxu0 %v3222_v39  ;;  %v2371_v4 = vmax.f32 %v2369_v59, 0.0  ;;  %2948 = vmatprep.subr.bf16.mxu1 %v3452_v56 }
 0x390   : > { %v2374_v31 = vpack.c.bf16 %v2372_v23, %v2372_v23 }
 0x391   : > { %v2373_v3 = vpack.c.bf16 %v2371_v4, %v2371_v4 }
 0x392   : > { %2924 = vmatpush3.bf16.msra.mxu0 %v3223_v52  ;;  %2542 = vmatprep.mubr.bf16.mxu0 %v2374_v31 }
 0x393   : > { %2925 = vmatprep.subr.bf16.mxu0 %v3224_v54  ;;  %2949 = vmatpush3.bf16.msra.mxu1 %v3234_v1 }
 0x394   : > { %2950 = vmatprep.subr.bf16.mxu1 %v3452_v56 }
 0x396   : > { %2926 = vmatpush3.bf16.msra.mxu0 %v3225_v15 }
 0x397   : > { %2927 = vmatprep.subr.bf16.mxu0 %v3226_v20  ;;  %2951 = vmatpush3.bf16.msra.mxu1 %v3235_v10 }
 0x39a   : > { %2928 = vmatpush3.bf16.msra.mxu0 %v3227_v12 }
 0x39b   : > { %2929 = vmatprep.subr.bf16.mxu0 %v3228_v45 }
 0x39e   : > { %2930 = vmatpush3.bf16.msra.mxu0 %v3229_v40 }
 0x39f   : > { %2931 = vmatprep.subr.bf16.mxu0 %v3230_v8 }
 0x3a2   : > { %2932 = vmatpush3.bf16.msra.mxu0 %v3231_v22 }
 0x3a5   : > { %2543 = vmatmul.mubr.bf16.vlgmr.msra.gmra.mxu0 %v2373_v3 }
 0x465   : > { %v2933_v26 = vpop.f32.mrf.mxu0 }
 0x467   : > { %v2934_v51 = vpop.f32.mrf.mxu0 }
 0x468   : > { %v2935_v6 = vadd.f32 %v2934_v51, %v2933_v26 }
 0x469   : > { %v2936_v7 = vpop.f32.mrf.mxu0 }
 0x46a   : > { %v2545_v36 = vadd.f32 %v2935_v6, %v2888_v38 }
 0x46b   : > { %v2937_v35 = vpop.f32.mrf.mxu0 }
 0x46c   : > { %v2550_v42 = vmax.f32 %v2545_v36, 0.0 }
 0x46e   : > { %v2551_v30 = vpack.c.bf16 %v2550_v42, %v2550_v42 }
 0x470   : > { %2953 = vmatmul.mubr.msk.bf16.vlgmr.msra.gmra.mxu1 %vm2591_vm14, %v2551_v30 }
 0x530   : > { %v2629_v43 = vpop.f32.mrf.mxu1 }
 0x531   : > { %v2630_v2 = vadd.f32 %v2905_v18, %v2629_v43 }
 0x532   : > { %v2954_v11 = vpop.f32.mrf.mxu1 }
 0x533   : > { %v2636_v57 = vsel %vm2635_vm12, %v2630_v2, -inf }
 0x534   : > { %2637 = vmax.xlane.f32.xlu0 %v2636_v57  ;;  %v2632_v49 = vpop.f32.mrf.mxu1 }
 0x536   : > { %v2955_v28 = vpop.f32.mrf.mxu1 }
 0x5bd   : > { %v2638_v27 = vpop.xlane.xlu0 %2637 }
 0x5be   : > { %v2639_v17 = vsub.f32 %v2630_v2, %v2638_v27 }
 0x5c0   : > { %v2640_v50 = vmul.f32 1.442695, %v2639_v17 }
 0x5c2   : > { %3236 = vpow2.f32 %v2640_v50 }
 0x5cf   : > { %v3237_v0 = vpop.eup %3236 }
 0x5d0   : > { %v2642_v55 = vsel %vm2635_vm12, %v3237_v0, 0.0 }
 0x5d1   : > { %2643 = vadd.xlane.f32.xlu0 %v2642_v55 }
 0x65a   : > { %v2644_v24 = vpop.xlane.xlu0 %2643 }
 0x65b   : > { %3238 = vrcp.f32 %v2644_v24 }
 0x668   : > { %v3239_v14 = vpop.eup %3238 }
 0x669   : > { %v2646_v62 = vmul.f32 %v3239_v14, %v3237_v0 }
 0x66b   : > { %2647 = vst.msk [vmem:[%s4430_s8] sm:$0xff] %vm2635_vm12, %v2646_v62 }
 0x66c PF: > { %s23_s10 = sadd.s32 1, %s3434_s10   ;;  %s4474_s27 = smov %s3418_s28 }
 0x66d   : > { %p20_p7 = scmp.ge.s32.totalorder %s23_s10, 5   ;;  %s4475_s28 = smov %s3422_s29 }
 0x66e   : > { %s4476_s29 = smov %s3606_s18  ;;  %s4477_s30 = smov %s3430_s9 }
 0x66f   : > { %s4478_s9 = smov %s4480_s21  ;;  %22 = sbr.rel (!%p20_p7) target bundleno = 9 (0x9), region = 121 }
 0x674   :  { %2667 = vsyncpa [#allocation4], 1 }
 0x675   :  { %2669 = vsyncpa [#allocation4 + $0x1], 1 }
 0x676   :  { %2670 = vsyncpa [#allocation6], 1 }
 0x677   :  { %2672 = vsyncpa [#allocation6 + $0x1], 1 }
 0x678   :  { %2673 = vsyncpa [#allocation9], 1 }

</bundles_post_ra>
